<compile_context>
chip_gen: v7x
topology: tpu7x:2x2x1
jax: 0.10.0
libtpu: 0.0.40
codegen_flags: <defaults>
</compile_context>

<pallas_src>
import jax
import jax.numpy as jnp
from jax.experimental import pallas as pl
from jax.experimental.pallas import tpu as pltpu

C_IN = 144
N_CONV = 256
HIDDEN = 512
N_OUT = 3
N_OUT_PAD = 128        # lane-dense padded fc2 output width
KSIZE = 5
PAD = 2

TARGET_CONV_ROWS = 2048    # aim for TB*l_chunk conv-matmul rows in this range
TB_CAP = 512


def _cdiv(a, b):
    return -(-a // b)


def _round_up(v, m):
    return _cdiv(v, m) * m


def _vmem_capacity_bytes():
    """Per-generation VMEM capacity; conservative (v7x) fallback."""
    try:
        info = pltpu.get_tpu_info()
        cap = getattr(info, "vmem_capacity_bytes", None)
        if cap:
            return int(cap)
    except Exception:
        pass
    return 64 * 1024 * 1024


def _l_chunk_for(tb, L):
    """Length-chunk (multiple of 8) so TB*l_chunk lands near TARGET_CONV_ROWS."""
    l_full = _round_up(max(L, 1), 8)
    lc = max(8, (TARGET_CONV_ROWS // tb) // 8 * 8)
    return min(lc, l_full)


def _tile_bytes(tb, L):
    """Rough per-grid-step VMEM working-set estimate."""
    lc = _l_chunk_for(tb, L)
    n_chunks = _cdiv(L, lc)
    lp = _round_up(n_chunks * lc + 2 * PAD, 8)
    x_tile = 2 * tb * lp * C_IN * 2                       # double-buffered bf16 input
    chunk = tb * lc * (2 * C_IN * 2 + 2 * N_CONV * 4)     # bf16 tap slices + f32 acc/tanh
    pool = tb * N_CONV * 4
    out = 2 * tb * N_OUT_PAD * 4
    weights = 2 * 1024 * 1024                             # resident weights + headroom
    return x_tile + chunk + pool + out + weights


def _pick_batch_tile(B, L, budget):
    b8 = max(8, _round_up(B, 8))
    tb = 8
    while tb < min(b8, TB_CAP) and _tile_bytes(tb * 2, L) <= budget:
        tb *= 2
    tb = min(tb, b8)
    # Keep >= 2 grid steps when the batch allows it, so a 2-TensorCore chip
    # (v7x) can shard the "parallel" batch axis across cores.
    if b8 >= 16:
        tb = min(tb, max(8, (b8 // 2) // 8 * 8))
    return tb


def _make_kernel(tb, l_chunk, n_chunks, l_real):
    need_mask = (n_chunks * l_chunk != l_real)
    inv_l = 1.0 / float(l_real)

    def kernel(x_ref, wc_ref, bconv_ref, w1_ref, b1_ref, w2_ref, b2_ref,
               out_ref, pool_acc):
        # x_ref    : (tb, Lp, C_IN)           bf16   pre-padded ('same' + alignment)
        # wc_ref   : (KSIZE, C_IN, N_CONV)    bf16   (K, C_in, C_out)
        # bconv_ref: (1, N_CONV)              f32
        # w1_ref   : (N_CONV, HIDDEN)         bf16 ; b1_ref: (1, HIDDEN)    f32
        # w2_ref   : (HIDDEN, N_OUT_PAD)      bf16 ; b2_ref: (1, N_OUT_PAD) f32
        # out_ref  : (tb, N_OUT_PAD)          f32
        # pool_acc : (tb, N_CONV)             f32    VMEM scratch
        pool_acc[...] = jnp.zeros_like(pool_acc)

        def conv_chunk(start):
            # Conv1d over rows [start, start+l_chunk) as 5 shifted-slice matmuls
            # (no lane-axis concatenate), accumulated in f32.
            acc = jnp.zeros((tb * l_chunk, N_CONV), jnp.float32)
            for k in range(KSIZE):
                xs = x_ref[:, pl.ds(start + k, l_chunk), :]        # (tb, lc, C_IN) bf16
                acc = acc + jnp.dot(xs.reshape(tb * l_chunk, C_IN), wc_ref[k],
                                    preferred_element_type=jnp.float32)
            t = jnp.tanh(acc + bconv_ref[...]).reshape(tb, l_chunk, N_CONV)
            if need_mask:
                rows = start + jax.lax.broadcasted_iota(jnp.int32, (1, l_chunk, 1), 1)
                t = jnp.where(rows < l_real, t, 0.0)
            pool_acc[...] += t.sum(axis=1)                          # (tb, N_CONV) f32

        if n_chunks == 1:
            conv_chunk(0)
        else:
            @pl.loop(0, n_chunks)
            def _(ci):
                conv_chunk(pl.multiple_of(ci * l_chunk, 8))

        # global average pool over the (real) length
        pooled = pool_acc[...] * inv_l                              # (tb, 256) f32

        # fc1 -> relu
        h = jnp.dot(pooled.astype(jnp.bfloat16), w1_ref[...],
                    preferred_element_type=jnp.float32)
        h = jnp.maximum(h + b1_ref[...], 0.0)                       # (tb, 512) f32

        # dropout(p=0.5): eval mode == identity.
        # TODO(synk): training-mode dropout (p=0.5) not implemented.

        # fc2 (lane-dense padded output)
        out = jnp.dot(h.astype(jnp.bfloat16), w2_ref[...],
                      preferred_element_type=jnp.float32)           # (tb, 128) f32
        out_ref[...] = (out + b2_ref[...]).astype(out_ref.dtype)

    return kernel


def cnn_nn_forward(x, params):
    """x: (B, L, C_IN) f32 (the PyTorch input before its internal transpose).
    params in PyTorch layouts:
      wconv (N_CONV, C_IN, KSIZE), bconv (N_CONV,),
      w1 (HIDDEN, N_CONV), b1 (HIDDEN,), w2 (N_OUT, HIDDEN), b2 (N_OUT,).
    Returns (B, N_OUT) f32 logits (eval-mode forward)."""
    wconv, bconv, w1, b1, w2, b2 = params
    B, L, C = x.shape
    assert C == C_IN

    vmem_cap = _vmem_capacity_bytes()
    budget = max(8 << 20, int(vmem_cap * 0.35))          # per-tile working-set budget
    vmem_limit = max(32 << 20, min(int(vmem_cap * 0.75), 96 << 20))

    tb = _pick_batch_tile(B, L, budget)
    grid_b = _cdiv(B, tb)
    b_pad = grid_b * tb

    l_chunk = _l_chunk_for(tb, L)
    n_chunks = _cdiv(L, l_chunk)
    lp = _round_up(n_chunks * l_chunk + 2 * PAD, 8)      # padded/aligned length

    # 'same' padding + chunk-alignment padding + batch padding, fused with the
    # bf16 cast in the wrapper (no in-kernel sublane concat).
    xb = jnp.pad(x, ((0, b_pad - B), (PAD, lp - PAD - L), (0, 0))).astype(jnp.bfloat16)

    # PyTorch -> kernel weight layouts (bf16 MXU operands, f32 biases).
    wc = jnp.transpose(wconv, (2, 1, 0)).astype(jnp.bfloat16)        # (K, C_in, C_out)
    bconv_f32 = bconv.reshape(1, N_CONV).astype(jnp.float32)
    w1_bf = jnp.transpose(w1).astype(jnp.bfloat16)                   # (N_CONV, HIDDEN)
    b1_f32 = b1.reshape(1, HIDDEN).astype(jnp.float32)
    w2_pad = jnp.zeros((HIDDEN, N_OUT_PAD), jnp.bfloat16).at[:, :N_OUT].set(
        jnp.transpose(w2).astype(jnp.bfloat16))
    b2_pad = jnp.zeros((1, N_OUT_PAD), jnp.float32).at[:, :N_OUT].set(
        b2.reshape(1, N_OUT).astype(jnp.float32))

    kernel = _make_kernel(tb, l_chunk, n_chunks, L)

    def const_spec(shape):
        return pl.BlockSpec(shape, lambda i, _s=shape: (0,) * len(_s))

    out = pl.pallas_call(
        kernel,
        out_shape=jax.ShapeDtypeStruct((b_pad, N_OUT_PAD), jnp.float32),
        grid=(grid_b,),
        in_specs=[
            pl.BlockSpec((tb, lp, C_IN), lambda i: (i, 0, 0)),   # batch-tiled padded x
            const_spec((KSIZE, C_IN, N_CONV)),                   # conv weight (resident)
            const_spec((1, N_CONV)),                             # conv bias
            const_spec((N_CONV, HIDDEN)),                        # fc1 weight
            const_spec((1, HIDDEN)),                             # fc1 bias
            const_spec((HIDDEN, N_OUT_PAD)),                     # fc2 weight (padded)
            const_spec((1, N_OUT_PAD)),                          # fc2 bias (padded)
        ],
        out_specs=pl.BlockSpec((tb, N_OUT_PAD), lambda i: (i, 0)),
        scratch_shapes=[pltpu.VMEM((tb, N_CONV), jnp.float32)],  # pooled-sum accumulator
        compiler_params=pltpu.CompilerParams(
            dimension_semantics=("parallel",),
            vmem_limit_bytes=vmem_limit,
        ),
    )(xb, wc, bconv_f32, w1_bf, b1_f32, w2_pad, b2_pad)

    return out[:B, :N_OUT]


def init_params(key):
    """PyTorch-layout params with PyTorch-style uniform(-1/sqrt(fan_in), ...) init."""
    ks = jax.random.split(key, 6)

    def unif(k, shape, fan_in):
        bound = 1.0 / jnp.sqrt(float(fan_in))
        return jax.random.uniform(k, shape, jnp.float32, -bound, bound)

    wconv = unif(ks[0], (N_CONV, C_IN, KSIZE), C_IN * KSIZE)   # Conv1d (C_out, C_in, K)
    bconv = unif(ks[1], (N_CONV,), C_IN * KSIZE)
    w1 = unif(ks[2], (HIDDEN, N_CONV), N_CONV)                 # Linear (out, in)
    b1 = unif(ks[3], (HIDDEN,), N_CONV)
    w2 = unif(ks[4], (N_OUT, HIDDEN), HIDDEN)
    b2 = unif(ks[5], (N_OUT,), HIDDEN)
    return (wconv, bconv, w1, b1, w2, b2)


def reference_forward(x, params):
    """Pure-jnp reference of the PyTorch forward (eval mode), using the same
    bf16 matmul operands / f32 accumulation structure as the kernel."""
    wconv, bconv, w1, b1, w2, b2 = params
    B, L, _ = x.shape
    xb = jnp.pad(x, ((0, 0), (PAD, PAD), (0, 0))).astype(jnp.bfloat16)
    wc = jnp.transpose(wconv, (2, 1, 0)).astype(jnp.bfloat16)        # (K, C_in, C_out)
    conv = jnp.zeros((B * L, N_CONV), jnp.float32)
    for k in range(KSIZE):
        conv = conv + jnp.dot(xb[:, k:k + L, :].reshape(B * L, C_IN), wc[k],
                              preferred_element_type=jnp.float32)
    conv = conv + bconv.reshape(1, N_CONV)
    pooled = jnp.mean(jnp.tanh(conv).reshape(B, L, N_CONV), axis=1)
    h = jnp.dot(pooled.astype(jnp.bfloat16), jnp.transpose(w1).astype(jnp.bfloat16),
                preferred_element_type=jnp.float32) + b1.reshape(1, HIDDEN)
    h = jnp.maximum(h, 0.0)
    out = jnp.dot(h.astype(jnp.bfloat16), jnp.transpose(w2).astype(jnp.bfloat16),
                  preferred_element_type=jnp.float32) + b2.reshape(1, N_OUT)
    return out


if __name__ == "__main__":
    key = jax.random.PRNGKey(0)
    kx, kp = jax.random.split(key)

    B, L = 16, 16   # small demo: two batch tiles of 8 (exercises the grid)
    x = jax.random.normal(kx, (B, L, C_IN), jnp.float32)
    params = init_params(kp)

    fwd = jax.jit(cnn_nn_forward)
    out = jax.block_until_ready(fwd(x, params))
    assert out.shape == (B, N_OUT)

    ref = reference_forward(x, params)
    assert jnp.allclose(out, ref, rtol=2e-2, atol=5e-3), "mismatch vs reference"

    print("KERNEL_OK")
</pallas_src>

<mosaic_0001>
module attributes {stable_mosaic.version = 11 : i64} {
  func.func @kernel(%arg0: i32, %arg1: memref<8x24x144xbf16, #tpu.memory_space<vmem>>, %arg2: memref<5x144x256xbf16, #tpu.memory_space<vmem>>, %arg3: memref<1x256xf32, #tpu.memory_space<vmem>>, %arg4: memref<256x512xbf16, #tpu.memory_space<vmem>>, %arg5: memref<1x512xf32, #tpu.memory_space<vmem>>, %arg6: memref<512x128xbf16, #tpu.memory_space<vmem>>, %arg7: memref<1x128xf32, #tpu.memory_space<vmem>>, %arg8: memref<8x128xf32, #tpu.memory_space<vmem>>, %arg9: memref<8x256xf32, #tpu.memory_space<vmem>>) attributes {dimension_semantics = [#tpu.dimension_semantics<parallel>], iteration_bounds = array<i64: 2>, scalar_prefetch = 0 : i64, scratch_operands = 1 : i64, tpu.core_type = #tpu.core_type<tc>, window_params = [{transform_indices = @transform_0, window_bounds = array<i64: 8, 24, 144>}, {pipeline_mode = #tpu.pipeline_mode<synchronous>, transform_indices = @transform_1, window_bounds = array<i64: 5, 144, 256>}, {pipeline_mode = #tpu.pipeline_mode<synchronous>, transform_indices = @transform_2, window_bounds = array<i64: 1, 256>}, {pipeline_mode = #tpu.pipeline_mode<synchronous>, transform_indices = @transform_3, window_bounds = array<i64: 256, 512>}, {pipeline_mode = #tpu.pipeline_mode<synchronous>, transform_indices = @transform_4, window_bounds = array<i64: 1, 512>}, {pipeline_mode = #tpu.pipeline_mode<synchronous>, transform_indices = @transform_5, window_bounds = array<i64: 512, 128>}, {pipeline_mode = #tpu.pipeline_mode<synchronous>, transform_indices = @transform_6, window_bounds = array<i64: 1, 128>}, {transform_indices = @transform_7, window_bounds = array<i64: 8, 128>}]} {
    %cst = arith.constant 0.000000e+00 : f32
    %0 = vector.broadcast %cst : f32 to vector<8x256xf32>
    %c0 = arith.constant 0 : index
    %c0_0 = arith.constant 0 : index
    %1 = vector.load %arg9[%c0, %c0_0] : memref<8x256xf32, #tpu.memory_space<vmem>>, vector<8x256xf32>
    tpu.vector_store %arg9[%c0, %c0_0], %0 {strides = array<i32>} : memref<8x256xf32, #tpu.memory_space<vmem>>, vector<8x256xf32>,
    %cst_1 = arith.constant 0.000000e+00 : f32
    %2 = vector.broadcast %cst_1 : f32 to vector<128x256xf32>
    %c0_2 = arith.constant 0 : index
    %c0_3 = arith.constant 0 : index
    %c0_4 = arith.constant 0 : index
    %3 = vector.load %arg1[%c0_2, %c0_3, %c0_4] : memref<8x24x144xbf16, #tpu.memory_space<vmem>>, vector<8x16x144xbf16>
    %4 = vector.shape_cast %3 : vector<8x16x144xbf16> to vector<128x144xbf16>
    %c0_5 = arith.constant 0 : index
    %c0_6 = arith.constant 0 : index
    %c0_7 = arith.constant 0 : index
    %5 = vector.load %arg2[%c0_5, %c0_6, %c0_7] : memref<5x144x256xbf16, #tpu.memory_space<vmem>>, vector<1x144x256xbf16>
    %6 = vector.shape_cast %5 : vector<1x144x256xbf16> to vector<144x256xbf16>
    %cst_8 = arith.constant dense<0.000000e+00> : vector<128x256xf32>
    %7 = tpu.matmul %4, %6, %cst_8 {dimension_numbers = #tpu.dot_dimension_numbers<[1], [0], [0], [1], [0, 0, 1, 1], [], []>} : vector<128x144xbf16>, vector<144x256xbf16>, vector<128x256xf32> -> vector<128x256xf32>
    %8 = arith.addf %2, %7 : vector<128x256xf32>
    %c0_9 = arith.constant 0 : index
    %c1 = arith.constant 1 : index
    %c0_10 = arith.constant 0 : index
    %9 = vector.load %arg1[%c0_9, %c1, %c0_10] : memref<8x24x144xbf16, #tpu.memory_space<vmem>>, vector<8x16x144xbf16>
    %10 = vector.shape_cast %9 : vector<8x16x144xbf16> to vector<128x144xbf16>
    %c1_11 = arith.constant 1 : index
    %c0_12 = arith.constant 0 : index
    %c0_13 = arith.constant 0 : index
    %11 = vector.load %arg2[%c1_11, %c0_12, %c0_13] : memref<5x144x256xbf16, #tpu.memory_space<vmem>>, vector<1x144x256xbf16>
    %12 = vector.shape_cast %11 : vector<1x144x256xbf16> to vector<144x256xbf16>
    %cst_14 = arith.constant dense<0.000000e+00> : vector<128x256xf32>
    %13 = tpu.matmul %10, %12, %cst_14 {dimension_numbers = #tpu.dot_dimension_numbers<[1], [0], [0], [1], [0, 0, 1, 1], [], []>} : vector<128x144xbf16>, vector<144x256xbf16>, vector<128x256xf32> -> vector<128x256xf32>
    %14 = arith.addf %8, %13 : vector<128x256xf32>
    %c0_15 = arith.constant 0 : index
    %c2 = arith.constant 2 : index
    %c0_16 = arith.constant 0 : index
    %15 = vector.load %arg1[%c0_15, %c2, %c0_16] : memref<8x24x144xbf16, #tpu.memory_space<vmem>>, vector<8x16x144xbf16>
    %16 = vector.shape_cast %15 : vector<8x16x144xbf16> to vector<128x144xbf16>
    %c2_17 = arith.constant 2 : index
    %c0_18 = arith.constant 0 : index
    %c0_19 = arith.constant 0 : index
    %17 = vector.load %arg2[%c2_17, %c0_18, %c0_19] : memref<5x144x256xbf16, #tpu.memory_space<vmem>>, vector<1x144x256xbf16>
    %18 = vector.shape_cast %17 : vector<1x144x256xbf16> to vector<144x256xbf16>
    %cst_20 = arith.constant dense<0.000000e+00> : vector<128x256xf32>
    %19 = tpu.matmul %16, %18, %cst_20 {dimension_numbers = #tpu.dot_dimension_numbers<[1], [0], [0], [1], [0, 0, 1, 1], [], []>} : vector<128x144xbf16>, vector<144x256xbf16>, vector<128x256xf32> -> vector<128x256xf32>
    %20 = arith.addf %14, %19 : vector<128x256xf32>
    %c0_21 = arith.constant 0 : index
    %c3 = arith.constant 3 : index
    %c0_22 = arith.constant 0 : index
    %21 = vector.load %arg1[%c0_21, %c3, %c0_22] : memref<8x24x144xbf16, #tpu.memory_space<vmem>>, vector<8x16x144xbf16>
    %22 = vector.shape_cast %21 : vector<8x16x144xbf16> to vector<128x144xbf16>
    %c3_23 = arith.constant 3 : index
    %c0_24 = arith.constant 0 : index
    %c0_25 = arith.constant 0 : index
    %23 = vector.load %arg2[%c3_23, %c0_24, %c0_25] : memref<5x144x256xbf16, #tpu.memory_space<vmem>>, vector<1x144x256xbf16>
    %24 = vector.shape_cast %23 : vector<1x144x256xbf16> to vector<144x256xbf16>
    %cst_26 = arith.constant dense<0.000000e+00> : vector<128x256xf32>
    %25 = tpu.matmul %22, %24, %cst_26 {dimension_numbers = #tpu.dot_dimension_numbers<[1], [0], [0], [1], [0, 0, 1, 1], [], []>} : vector<128x144xbf16>, vector<144x256xbf16>, vector<128x256xf32> -> vector<128x256xf32>
    %26 = arith.addf %20, %25 : vector<128x256xf32>
    %c0_27 = arith.constant 0 : index
    %c4 = arith.constant 4 : index
    %c0_28 = arith.constant 0 : index
    %27 = vector.load %arg1[%c0_27, %c4, %c0_28] : memref<8x24x144xbf16, #tpu.memory_space<vmem>>, vector<8x16x144xbf16>
    %28 = vector.shape_cast %27 : vector<8x16x144xbf16> to vector<128x144xbf16>
    %c4_29 = arith.constant 4 : index
    %c0_30 = arith.constant 0 : index
    %c0_31 = arith.constant 0 : index
    %29 = vector.load %arg2[%c4_29, %c0_30, %c0_31] : memref<5x144x256xbf16, #tpu.memory_space<vmem>>, vector<1x144x256xbf16>
    %30 = vector.shape_cast %29 : vector<1x144x256xbf16> to vector<144x256xbf16>
    %cst_32 = arith.constant dense<0.000000e+00> : vector<128x256xf32>
    %31 = tpu.matmul %28, %30, %cst_32 {dimension_numbers = #tpu.dot_dimension_numbers<[1], [0], [0], [1], [0, 0, 1, 1], [], []>} : vector<128x144xbf16>, vector<144x256xbf16>, vector<128x256xf32> -> vector<128x256xf32>
    %32 = arith.addf %26, %31 : vector<128x256xf32>
    %c0_33 = arith.constant 0 : index
    %c0_34 = arith.constant 0 : index
    %33 = vector.load %arg3[%c0_33, %c0_34] : memref<1x256xf32, #tpu.memory_space<vmem>>, vector<1x256xf32>
    %34 = vector.broadcast %33 : vector<1x256xf32> to vector<128x256xf32>
    %35 = arith.addf %32, %34 : vector<128x256xf32>
    %36 = math.tanh %35 : vector<128x256xf32>
    %37 = vector.shape_cast %36 : vector<128x256xf32> to vector<8x16x256xf32>
    %c0_35 = arith.constant 0 : index
    %c0_36 = arith.constant 0 : index
    %38 = vector.load %arg9[%c0_35, %c0_36] : memref<8x256xf32, #tpu.memory_space<vmem>>, vector<8x256xf32>
    %cst_37 = arith.constant dense<0.000000e+00> : vector<8x256xf32>
    %39 = vector.multi_reduction <add>, %37, %cst_37 [1] : vector<8x16x256xf32> to vector<8x256xf32>
    %40 = arith.addf %38, %39 : vector<8x256xf32>
    %c0_38 = arith.constant 0 : index
    %c0_39 = arith.constant 0 : index
    %41 = vector.load %arg9[%c0_38, %c0_39] : memref<8x256xf32, #tpu.memory_space<vmem>>, vector<8x256xf32>
    tpu.vector_store %arg9[%c0_38, %c0_39], %40 {strides = array<i32>} : memref<8x256xf32, #tpu.memory_space<vmem>>, vector<8x256xf32>,
    %c0_40 = arith.constant 0 : index
    %c0_41 = arith.constant 0 : index
    %42 = vector.load %arg9[%c0_40, %c0_41] : memref<8x256xf32, #tpu.memory_space<vmem>>, vector<8x256xf32>
    %cst_42 = arith.constant 6.250000e-02 : f32
    %43 = vector.broadcast %cst_42 : f32 to vector<8x256xf32>
    %44 = arith.mulf %42, %43 : vector<8x256xf32>
    %45 = arith.truncf %44 : vector<8x256xf32> to vector<8x256xbf16>
    %c0_43 = arith.constant 0 : index
    %c0_44 = arith.constant 0 : index
    %46 = vector.load %arg4[%c0_43, %c0_44] : memref<256x512xbf16, #tpu.memory_space<vmem>>, vector<256x512xbf16>
    %cst_45 = arith.constant dense<0.000000e+00> : vector<8x512xf32>
    %47 = tpu.matmul %45, %46, %cst_45 {dimension_numbers = #tpu.dot_dimension_numbers<[1], [0], [0], [1], [0, 0, 1, 1], [], []>} : vector<8x256xbf16>, vector<256x512xbf16>, vector<8x512xf32> -> vector<8x512xf32>
    %c0_46 = arith.constant 0 : index
    %c0_47 = arith.constant 0 : index
    %48 = vector.load %arg5[%c0_46, %c0_47] : memref<1x512xf32, #tpu.memory_space<vmem>>, vector<1x512xf32>
    %49 = vector.broadcast %48 : vector<1x512xf32> to vector<8x512xf32>
    %50 = arith.addf %47, %49 : vector<8x512xf32>
    %cst_48 = arith.constant 0.000000e+00 : f32
    %51 = vector.broadcast %cst_48 : f32 to vector<8x512xf32>
    %52 = arith.maximumf %50, %51 : vector<8x512xf32>
    %53 = arith.truncf %52 : vector<8x512xf32> to vector<8x512xbf16>
    %c0_49 = arith.constant 0 : index
    %c0_50 = arith.constant 0 : index
    %54 = vector.load %arg6[%c0_49, %c0_50] : memref<512x128xbf16, #tpu.memory_space<vmem>>, vector<512x128xbf16>
    %cst_51 = arith.constant dense<0.000000e+00> : vector<8x128xf32>
    %55 = tpu.matmul %53, %54, %cst_51 {dimension_numbers = #tpu.dot_dimension_numbers<[1], [0], [0], [1], [0, 0, 1, 1], [], []>} : vector<8x512xbf16>, vector<512x128xbf16>, vector<8x128xf32> -> vector<8x128xf32>
    %c0_52 = arith.constant 0 : index
    %c0_53 = arith.constant 0 : index
    %56 = vector.load %arg7[%c0_52, %c0_53] : memref<1x128xf32, #tpu.memory_space<vmem>>, vector<1x128xf32>
    %57 = vector.broadcast %56 : vector<1x128xf32> to vector<8x128xf32>
    %58 = arith.addf %55, %57 : vector<8x128xf32>
    %c0_54 = arith.constant 0 : index
    %c0_55 = arith.constant 0 : index
    %59 = vector.load %arg8[%c0_54, %c0_55] : memref<8x128xf32, #tpu.memory_space<vmem>>, vector<8x128xf32>
    tpu.vector_store %arg8[%c0_54, %c0_55], %58 {strides = array<i32>} : memref<8x128xf32, #tpu.memory_space<vmem>>, vector<8x128xf32>,
    return
  }
  func.func @transform_0(%arg0: i32) -> (i32, i32, i32) {
    %c0_i32 = arith.constant 0 : i32
    %c0_i32_0 = arith.constant 0 : i32
    %c0_i32_1 = arith.constant 0 : i32
    return %arg0, %c0_i32, %c0_i32_0 : i32, i32, i32
  }
  func.func @transform_1(%arg0: i32) -> (i32, i32, i32) {
    %c0_i32 = arith.constant 0 : i32
    %c0_i32_0 = arith.constant 0 : i32
    %c0_i32_1 = arith.constant 0 : i32
    %c0_i32_2 = arith.constant 0 : i32
    return %c0_i32, %c0_i32_0, %c0_i32_1 : i32, i32, i32
  }
  func.func @transform_2(%arg0: i32) -> (i32, i32) {
    %c0_i32 = arith.constant 0 : i32
    %c0_i32_0 = arith.constant 0 : i32
    %c0_i32_1 = arith.constant 0 : i32
    return %c0_i32, %c0_i32_0 : i32, i32
  }
  func.func @transform_3(%arg0: i32) -> (i32, i32) {
    %c0_i32 = arith.constant 0 : i32
    %c0_i32_0 = arith.constant 0 : i32
    %c0_i32_1 = arith.constant 0 : i32
    return %c0_i32, %c0_i32_0 : i32, i32
  }
  func.func @transform_4(%arg0: i32) -> (i32, i32) {
    %c0_i32 = arith.constant 0 : i32
    %c0_i32_0 = arith.constant 0 : i32
    %c0_i32_1 = arith.constant 0 : i32
    return %c0_i32, %c0_i32_0 : i32, i32
  }
  func.func @transform_5(%arg0: i32) -> (i32, i32) {
    %c0_i32 = arith.constant 0 : i32
    %c0_i32_0 = arith.constant 0 : i32
    %c0_i32_1 = arith.constant 0 : i32
    return %c0_i32, %c0_i32_0 : i32, i32
  }
  func.func @transform_6(%arg0: i32) -> (i32, i32) {
    %c0_i32 = arith.constant 0 : i32
    %c0_i32_0 = arith.constant 0 : i32
    %c0_i32_1 = arith.constant 0 : i32
    return %c0_i32, %c0_i32_0 : i32, i32
  }
  func.func @transform_7(%arg0: i32) -> (i32, i32) {
    %c0_i32 = arith.constant 0 : i32
    %c0_i32_0 = arith.constant 0 : i32
    return %arg0, %c0_i32 : i32, i32
  }
}

</mosaic_0001>

<bundles_post_ra>
// kernel: cnn_nn_forward.1
= control target key start
LH: loop header
LB: loop body
LE: loop exit
PB: predicated region body
PF: predicated region fallthrough
CT: control target
= control target key end

     0   :  { %s4604_s24 = smov 0   ;;  %s6021_s0 = inlined_call_operand.vmem [shape: bf16[16,24,144], index: 0, kind: input, shape index: {}]   ;;  %s6022_s1 = inlined_call_operand.vmem [shape: bf16[5,144,256], index: 1, kind: input, shape index: {}]   ;;  %s6023_s2 = inlined_call_operand.vmem [shape: f32[1,256], index: 2, kind: input, shape index: {}]   ;;  %s6024_s3 = inlined_call_operand.vmem [shape: bf16[256,512], index: 3, kind: input, shape index: {}]   ;;  %s6025_s4 = inlined_call_operand.vmem [shape: f32[1,512], index: 4, kind: input, shape index: {}]   ;;  %s6026_s5 = inlined_call_operand.vmem [shape: bf16[512,128], index: 5, kind: input, shape index: {}]   ;;  %s6027_s6 = inlined_call_operand.vmem [shape: f32[1,128], index: 6, kind: input, shape index: {}]   ;;  %s6028_s7 = inlined_call_operand.vmem [shape: f32[16,128], index: 7, kind: output, shape index: {}]  }
   0x1 LB: > { %s4610_s25 = sadd.s32 4294967295, %s4562_s24   ;;  %p3623_p0 = scmp.ge.s32.totalorder %s4562_s24, 1  ;;  %s4562_s24 = sphi %s4604_s24, %s17_s24  }
   0x2   : > { %p239_p1 = scmp.lt.s32.totalorder %s4562_s24, 3 }
   0x4   : > { %p240_p2 = pnand %p3623_p0, %p239_p1 }
   0x5   : > { %v4205_v0 = vld [vmem:[%s6022_s1 + $0x4] ss:$8 sps:$4 sm:$0xff] (!%p240_p2)   ;;  %s3624_s28 = sshll.u32 (!%p240_p2), %s4610_s25, 3  ;;  %v4207_v1 = vld [vmem:[%s6022_s1] ss:$8 sps:$4 sm:$0xff] (!%p240_p2)   ;;  %vm687_vm0 = vcmask (!%p240_p2), 130048  }
   0x6   : > { %243 = sbr.rel (%p240_p2) target bundleno = 1042 (0x412), region = 48  ;;  %p272_p3 = scmp.lt.s32.totalorder (!%p240_p2), %s3624_s28, 15  ;;  %1011 = vmatprep.subr.bf16.mxu0 (!%p240_p2), %v4205_v0  ;;  %v4208_v2 = vld [vmem:[%s6022_s1 + $0x14] ss:$8 sps:$4 sm:$0xff] (!%p240_p2)   ;;  %v4210_v3 = vld [vmem:[%s6022_s1 + $0x10] ss:$8 sps:$4 sm:$0xff] (!%p240_p2)  }
   0x7   : > { %1012 = vmatpush1.bf16.msra.mxu0 (!%p240_p2), %v4207_v1  ;;  %v4211_v4 = vld [vmem:[%s6022_s1 + $0x24] ss:$8 sps:$4 sm:$0xff] (!%p240_p2)   ;;  %v4213_v5 = vld [vmem:[%s6022_s1 + $0x20] ss:$8 sps:$4 sm:$0xff] (!%p240_p2)   ;;  %v4214_v6 = vld [vmem:[%s6022_s1 + $0x34] ss:$8 sps:$4 sm:$0xff] (!%p240_p2)  }
   0x8   : > { %1013 = vmatprep.subr.bf16.mxu0 (!%p240_p2), %v4208_v2  ;;  %v4216_v7 = vld [vmem:[%s6022_s1 + $0x30] ss:$8 sps:$4 sm:$0xff] (!%p240_p2)   ;;  %v4217_v8 = vld [vmem:[%s6022_s1 + $0x44] ss:$8 sps:$4 sm:$0xff] (!%p240_p2)   ;;  %v4219_v12 = vld [vmem:[%s6022_s1 + $0x40] ss:$8 sps:$4 sm:$0xff] (!%p240_p2)  }
   0x9   : > { %v4220_v13 = vld [vmem:[%s6022_s1 + $0x54] ss:$8 sps:$4 sm:$0xff] (!%p240_p2)   ;;  %v4222_v14 = vld [vmem:[%s6022_s1 + $0x50] ss:$8 sps:$4 sm:$0xff] (!%p240_p2)   ;;  %v4223_v15 = vld [vmem:[%s6022_s1 + $0x64] ss:$8 sps:$4 sm:$0xff] (!%p240_p2)  }
   0xa   : > { %v4225_v16 = vld [vmem:[%s6022_s1 + $0x60] ss:$8 sps:$4 sm:$0xff] (!%p240_p2)   ;;  %v4226_v17 = vld [vmem:[%s6022_s1 + $0x74] ss:$8 sps:$4 sm:$0xff] (!%p240_p2)   ;;  %v4228_v18 = vld [vmem:[%s6022_s1 + $0x70] ss:$8 sps:$4 sm:$0xff] (!%p240_p2)  }
   0xb   : > { %1014 = vmatpush1.bf16.msra.mxu0 (!%p240_p2), %v4210_v3  ;;  %v4229_v19 = vld [vmem:[%s6022_s1 + $0x84] ss:$8 sps:$4 sm:$0xff] (!%p240_p2)   ;;  %v4231_v20 = vld [vmem:[%s6022_s1 + $0x80] ss:$8 sps:$4 sm:$0xff] (!%p240_p2)   ;;  %v4241_v27 = vld [vmem:[%s6022_s1 + $0x134] ss:$8 sps:$4 sm:$0xff] (!%p240_p2)  }
   0xc   : > { %1015 = vmatprep.subr.bf16.mxu0 (!%p240_p2), %v4211_v4  ;;  %v4236_v21 = vld [vmem:[%s6022_s1 + $0x124] ss:$8 sps:$4 sm:$0xff] (!%p240_p2)   ;;  %v4234_v25 = vld [vmem:[%s6022_s1 + $0x120] ss:$8 sps:$4 sm:$0xff] (!%p240_p2)   ;;  %v4239_v28 = vld [vmem:[%s6022_s1 + $0x130] ss:$8 sps:$4 sm:$0xff] (!%p240_p2)  }
   0xd   : > { %s6053_s28 = smov (!%p272_p3, %s3624_s28), 15  ;;  %v4245_v31 = vld [vmem:[%s6022_s1 + $0x144] ss:$8 sps:$4 sm:$0xff]   ;;  %v4243_v34 = vld [vmem:[%s6022_s1 + $0x140] ss:$8 sps:$4 sm:$0xff]   ;;  %vm1148_vm1 = vcmask 1042432  }
   0xe   : > { %s4196_s14 = smul.u32 24, %s6053_s28  ;;  %v4249_v35 = vld [vmem:[%s6022_s1 + $0x154] ss:$8 sps:$4 sm:$0xff]   ;;  %v4247_v36 = vld [vmem:[%s6022_s1 + $0x150] ss:$8 sps:$4 sm:$0xff]   ;;  %vm1149_vm2 = vcmask 1046532  }
   0xf   : > { %1016 = vmatpush1.bf16.msra.mxu0 %v4213_v5  ;;  %v4254_v39 = vld [vmem:[%s6022_s1 + $0x164] ss:$8 sps:$4 sm:$0xff]   ;;  %v4252_v42 = vld [vmem:[%s6022_s1 + $0x160] ss:$8 sps:$4 sm:$0xff]   ;;  %v4259_v43 = vld [vmem:[%s6022_s1 + $0x174] ss:$8 sps:$4 sm:$0xff]  }
  0x10   : > { %s4639_s21 = scalar_lea.vmem %s6021_s0, %s4196_s14  ;;  %1017 = vmatprep.subr.bf16.mxu0 %v4214_v6  ;;  %v4257_v45 = vld [vmem:[%s6022_s1 + $0x170] ss:$8 sps:$4 sm:$0xff]   ;;  %v4264_v47 = vld [vmem:[%s6022_s1 + $0x184] ss:$8 sps:$4 sm:$0xff]   ;;  %v4262_v49 = vld [vmem:[%s6022_s1 + $0x180] ss:$8 sps:$4 sm:$0xff]  }
  0x11   : > { %v4648_v9 = vld [vmem:[%s4639_s21] sm:$0xff]  ;;  %v4651_v10 = vld [vmem:[%s4639_s21 + $0x8] sm:$0xff]  ;;  %v4687_v22 = vld [vmem:[%s4639_s21 + $0x18] sm:$0xff]  ;;  %vm327_vm4 = vsmask.f32 3328  ;;  %vm2094_vm10 = vcmask 1041408  }
  0x12   : > { %v3688_v11 = vcombine.high %v4648_v9, %v4651_v10  ;;  %v4690_v23 = vld [vmem:[%s4639_s21 + $0x20] sm:$0xff]  ;;  %v3687_v24 = vcombine.low %v4648_v9, %v4651_v10  ;;  %v4707_v29 = vld [vmem:[%s4639_s21 + $0x30] sm:$0xff]  ;;  %v4710_v30 = vld [vmem:[%s4639_s21 + $0x38] sm:$0xff]  ;;  %vm328_vm5 = vsmask.f32 7440  ;;  %vm2095_vm11 = vcmask 1045508  }
  0x13   : > { %1018 = vmatpush1.bf16.msra.mxu0 %v4216_v7  ;;  %v3690_v26 = vcombine.high %v4687_v22, %v4690_v23  ;;  %v3689_v32 = vcombine.low %v4687_v22, %v4690_v23  ;;  %v3692_v33 = vcombine.high %v4707_v29, %v4710_v30  ;;  %v4730_v37 = vld [vmem:[%s4639_s21 + $0x48] sm:$0xff]  ;;  %v4733_v38 = vld [vmem:[%s4639_s21 + $0x50] sm:$0xff]  ;;  %v3691_v40 = vcombine.low %v4707_v29, %v4710_v30  ;;  %v4750_v44 = vld [vmem:[%s4639_s21 + $0x60] sm:$0xff]  ;;  %p278_p4 = scmp.lt.s32.totalorder %s4610_s25, 1 }
  0x14   : > { %3721 = vmatprep.mubr.msk.bf16.mxu0 %vm687_vm0, %v3688_v11  ;;  %1019 = vmatprep.subr.bf16.mxu0 %v4217_v8  ;;  %v3694_v41 = vcombine.high %v4730_v37, %v4733_v38  ;;  %v4756_v46 = vld [vmem:[%s4639_s21 + $0x68] sm:$0xff]  ;;  %v3693_v48 = vcombine.low %v4730_v37, %v4733_v38  ;;  %v4269_v51 = vld [vmem:[%s6022_s1 + $0x194] ss:$8 sps:$4 sm:$0xff]   ;;  %v4316_v53 = vld [vmem:[%s6022_s1 + $0x90] ss:$8 sps:$4 sm:$0xff]   ;;  %vm2693_vm13 = vcmask 1041409  }
  0x15   : > { %v3696_v50 = vcombine.high %v4750_v44, %v4756_v46  ;;  %v4314_v52 = vld [vmem:[%s6022_s1 + $0x94] ss:$8 sps:$4 sm:$0xff]   ;;  %v4267_v55 = vld [vmem:[%s6022_s1 + $0x190] ss:$8 sps:$4 sm:$0xff]   ;;  %v4785_v56 = vld [vmem:[%s4639_s21 + $0x80] sm:$0xff]  ;;  %v3695_v59 = vcombine.low %v4750_v44, %v4756_v46  ;;  %vm2695_vm14 = vcmask 1042434  }
  0x16   : > { %v4779_v54 = vld [vmem:[%s4639_s21 + $0x78] sm:$0xff]  ;;  %v4274_v57 = vld [vmem:[%s6022_s1 + $0x1a4] ss:$8 sps:$4 sm:$0xff]   ;;  %712 = vmatprep.subr.bf16.mxu1 %v4314_v52  ;;  %v4322_v60 = vld [vmem:[%s6022_s1 + $0xa0] ss:$8 sps:$4 sm:$0xff]   ;;  %vm2697_vm15 = vcmask 1043459  }
  0x17   : > { %1020 = vmatpush1.bf16.msra.mxu0 %v4219_v12  ;;  %713 = vmatpush1.bf16.msra.mxu1 %v4316_v53  ;;  %v4320_v58 = vld [vmem:[%s6022_s1 + $0xa4] ss:$8 sps:$4 sm:$0xff]   ;;  %v3698_v61 = vcombine.high %v4779_v54, %v4785_v56  ;;  %v4272_v62 = vld [vmem:[%s6022_s1 + $0x1a0] ss:$8 sps:$4 sm:$0xff]   ;;  %v4277_v63 = vld [vmem:[%s6022_s1 + $0x1b4] ss:$8 sps:$4 sm:$0xff]   ;;  %v3697_v5 = vcombine.low %v4779_v54, %v4785_v56 }
  0x18   : > { %1021 = vmatprep.subr.bf16.mxu0 %v4220_v13  ;;  %714 = vmatprep.subr.bf16.mxu1 %v4320_v58  ;;  %v4323_v0 = vld [vmem:[%s6022_s1 + $0xb4] ss:$8 sps:$4 sm:$0xff]   ;;  %v4325_v1 = vld [vmem:[%s6022_s1 + $0xb0] ss:$8 sps:$4 sm:$0xff]   ;;  %v4329_v4 = vld [vmem:[%s6022_s1 + $0xc4] ss:$8 sps:$4 sm:$0xff]  }
  0x19   : > { %v4814_v2 = vld [vmem:[%s4639_s21 + $0x90] sm:$0xff]  ;;  %v4817_v3 = vld [vmem:[%s4639_s21 + $0x98] sm:$0xff]  ;;  %v4331_v6 = vld [vmem:[%s6022_s1 + $0xc0] ss:$8 sps:$4 sm:$0xff]   ;;  %vm1549_vm7 = vsmask.f32 2304 }
  0x1a   : > { %v3700_v7 = vcombine.high %v4814_v2, %v4817_v3  ;;  %v4332_v8 = vld [vmem:[%s6022_s1 + $0xd4] ss:$8 sps:$4 sm:$0xff]   ;;  %v4833_v11 = vld [vmem:[%s4639_s21 + $0xa8] sm:$0xff]  ;;  %v4334_v12 = vld [vmem:[%s6022_s1 + $0xd0] ss:$8 sps:$4 sm:$0xff]   ;;  %s6055_s25 = smov (!%p278_p4, %s4610_s25), 1 }
  0x1b   : > { %1022 = vmatpush1.bf16.msra.mxu0 %v4222_v14  ;;  %715 = vmatpush1.bf16.msra.mxu1 %v4322_v60  ;;  %v4840_v13 = vld [vmem:[%s4639_s21 + $0xb0] sm:$0xff]  ;;  %vm4870_vm3 = vmor %vm1148_vm1, %vm1149_vm2  ;;  %v344_v60 = vshrl.u32 %v4651_v10, 16  ;;  %vm1550_vm8 = vsmask.f32 6416  ;;  %vm2701_vm1 = vcmask 1045509   ;;  %vm2703_vm2 = vcmask 1046534  }
  0x1c   : > { %1023 = vmatprep.subr.bf16.mxu0 %v4223_v15  ;;  %716 = vmatprep.subr.bf16.mxu1 %v4323_v0  ;;  %v4843_v14 = vld [vmem:[%s4639_s21 + $0x10] sm:$0x11]  ;;  %v4338_v15 = vld [vmem:[%s6022_s1 + $0xe4] ss:$8 sps:$4 sm:$0xff]   ;;  %vm4951_vm6 = vmor %vm327_vm4, %vm328_vm5  ;;  %s3626_s15 = sshll.u32 %s6055_s25, 3 }
  0x1d   : > { %vm5313_vm9 = vmor %vm1549_vm7, %vm1550_vm8  ;;  %s281_s18 = scalar_lea.vmem %s6028_s7, %s3626_s15 }
  0x1e   : > { %vm5492_vm12 = vmor %vm2094_vm10, %vm2095_vm11 }
  0x1f   : > { %1024 = vmatpush1.bf16.msra.mxu0 %v4225_v16  ;;  %717 = vmatpush1.bf16.msra.mxu1 %v4325_v1  ;;  %v4849_v16 = vld [vmem:[%s4639_s21] sm:$0xee]  ;;  %v451_v1 = vshrl.u32 %v4779_v54, 16 }
  0x20   : > { %1025 = vmatprep.subr.bf16.mxu0 %v4226_v17  ;;  %718 = vmatprep.subr.bf16.mxu1 %v4329_v4  ;;  %v1153_v17 = vrot.slane %v4651_v10, 5 }
  0x23   : > { %1026 = vmatpush1.bf16.msra.mxu0 %v4228_v18  ;;  %719 = vmatpush1.bf16.msra.mxu1 %v4331_v6  ;;  %v4340_v18 = vld [vmem:[%s6022_s1 + $0xe0] ss:$8 sps:$4 sm:$0xff]   ;;  %v346_v6 = vrot.slane %v344_v60, 4 }
  0x24   : > { %1027 = vmatprep.subr.bf16.mxu0 %v4229_v19  ;;  %720 = vmatprep.subr.bf16.mxu1 %v4332_v8  ;;  %v1160_v19 = vrot.slane %v4690_v23, 5  ;;  %v454_v8 = vshll.u32 %v4779_v54, 16 }
  0x27   : > { %1028 = vmatpush1.bf16.msra.mxu0 %v4231_v20  ;;  %v331_v20 = vshrl.u32 %v4648_v9, 16  ;;  %721 = vmatpush1.bf16.msra.mxu1 %v4334_v12 }
  0x28   : > { %1396 = vmatprep.subr.bf16.mxu0 %v4236_v21  ;;  %v3699_v21 = vcombine.low %v4814_v2, %v4817_v3  ;;  %722 = vmatprep.subr.bf16.mxu1 %v4338_v15 }
  0x2a   : > { %1044 = vmatmul.mubr.bf16.vlgmr.msra.gmra.mrb[0].mxu0 %v3687_v24  ;;  %v1167_v24 = vrot.slane %v4710_v30, 5 }
  0x2b   : > { %1397 = vmatpush1.bf16.msra.mxu0 %v4234_v25  ;;  %3722 = vmatprep.mubr.msk.bf16.mxu0 %vm687_vm0, %v3690_v26  ;;  %v334_v25 = vshll.u32 %v4648_v9, 16  ;;  %v355_v26 = vshrl.u32 %v4687_v22, 16  ;;  %v6042_v9 = vshrl.u32 %v4833_v11, 16 }
  0x2c   : > { %1398 = vmatprep.subr.bf16.mxu0 %v4241_v27  ;;  %v358_v27 = vshll.u32 %v4687_v22, 16  ;;  %723 = vmatpush1.bf16.msra.mxu1 %v4340_v18  ;;  %v4353_v18 = vld [vmem:[%s6022_s1 + $0x114] ss:$8 sps:$4 sm:$0xff]   ;;  %v5019_v22 = vld [vmem:[%s4639_s21 + $0x48] sm:$0xee] }
  0x2f   : > { %1399 = vmatpush1.bf16.msra.mxu0 %v4239_v28  ;;  %v3702_v28 = vcombine.high %v4833_v11, %v4840_v13 }
  0x30   : > { %1400 = vmatprep.subr.bf16.mxu0 %v4245_v31  ;;  %v3729_v31 = vrot.slane %v4849_v16, 9 }
  0x32   : > { %1054 = vmatmul.mubr.bf16.gmra.mrb[4].mxu0 %v3689_v32  ;;  %v1155_v32 = vrot.slane %v1153_v17, 4  ;;  %v4903_v52 = vsel %vm4870_vm3, %v3729_v31, %v1153_v17  ;;  %v475_v31 = vshrl.u32 %v4814_v2, 16 }
  0x33   : > { %3723 = vmatprep.mubr.msk.bf16.mxu0 %vm687_vm0, %v3692_v33  ;;  %1401 = vmatpush1.bf16.msra.mxu0 %v4243_v34  ;;  %v1156_v33 = vrot.slane %v4843_v14, 5  ;;  %v379_v34 = vshrl.u32 %v4707_v29, 16 }
  0x34   : > { %1402 = vmatprep.subr.bf16.mxu0 %v4249_v35  ;;  %v382_v35 = vshll.u32 %v4707_v29, 16 }
  0x35   : > { %v4907_v53 = vsel %vm4870_vm3, %v1155_v32, %v1156_v33 }
  0x36   : > { %v3756_v4 = vcombine.high %v4903_v52, %v4907_v53 }
  0x37   : > { %1403 = vmatpush1.bf16.msra.mxu0 %v4247_v36  ;;  %v1162_v36 = vrot.slane %v1160_v19, 4 }
  0x38   : > { %1404 = vmatprep.subr.bf16.mxu0 %v4254_v39  ;;  %v1174_v39 = vrot.slane %v4733_v38, 5 }
  0x3a   : > { %1064 = vmatmul.mubr.bf16.gmra.mrb[8].mxu0 %v3691_v40  ;;  %v4341_v40 = vld [vmem:[%s6022_s1 + $0xf4] ss:$8 sps:$4 sm:$0xff]   ;;  %v4915_v58 = vrot.slane %v1174_v39, 4 }
  0x3b   : > { %3724 = vmatprep.mubr.msk.bf16.mxu0 %vm687_vm0, %v3694_v41  ;;  %1405 = vmatpush1.bf16.msra.mxu0 %v4252_v42  ;;  %v403_v41 = vshrl.u32 %v4730_v37, 16  ;;  %v406_v42 = vshll.u32 %v4730_v37, 16 }
  0x3c   : > { %1406 = vmatprep.subr.bf16.mxu0 %v4259_v43  ;;  %v427_v43 = vshrl.u32 %v4750_v44, 16  ;;  %724 = vmatprep.subr.bf16.mxu1 %v4341_v40 }
  0x3f   : > { %1407 = vmatpush1.bf16.msra.mxu0 %v4257_v45  ;;  %v4885_v45 = vrot.slane %v1167_v24, 4 }
  0x40   : > { %1408 = vmatprep.subr.bf16.mxu0 %v4264_v47  ;;  %v4889_v47 = vld [vmem:[%s4639_s21 + $0x28] sm:$0x11] }
  0x41   : > { %v1163_v15 = vrot.slane %v4889_v47, 5 }
  0x42   : > { %1074 = vmatmul.mubr.bf16.gmra.mrb[12].mxu0 %v3693_v48  ;;  %v4892_v48 = vld [vmem:[%s4639_s21 + $0x18] sm:$0xee] }
  0x43   : > { %3725 = vmatprep.mubr.msk.bf16.mxu0 %vm687_vm0, %v3696_v50  ;;  %1409 = vmatpush1.bf16.msra.mxu0 %v4262_v49  ;;  %v4346_v49 = vld [vmem:[%s6022_s1 + $0xf0] ss:$8 sps:$4 sm:$0xff]   ;;  %v4347_v50 = vld [vmem:[%s6022_s1 + $0x104] ss:$8 sps:$4 sm:$0xff]   ;;  %v3730_v12 = vrot.slane %v4892_v48, 9 }
  0x44   : > { %1410 = vmatprep.subr.bf16.mxu0 %v4269_v51  ;;  %v430_v51 = vshll.u32 %v4750_v44, 16  ;;  %725 = vmatpush1.bf16.msra.mxu1 %v4346_v49 }
  0x45   : > { %726 = vmatprep.subr.bf16.mxu1 %v4347_v50  ;;  %v3755_v50 = vcombine.low %v4903_v52, %v4907_v53  ;;  %v6030_v52 = vshll.u32 %v4690_v23, 16 }
  0x47   : > { %1411 = vmatpush1.bf16.msra.mxu0 %v4267_v55  ;;  %v340_v55 = vshll.u32 %v4651_v10, 16 }
  0x48   : > { %1412 = vmatprep.subr.bf16.mxu0 %v4274_v57  ;;  %v4349_v57 = vld [vmem:[%s6022_s1 + $0x100] ss:$8 sps:$4 sm:$0xff]  }
  0x49   : > { %v342_v0 = vrot.slane %v340_v55, 5  ;;  %727 = vmatpush1.bf16.msra.mxu1 %v4349_v57  ;;  %v4961_v57 = vsel %vm4870_vm3, %v3730_v12, %v1160_v19 }
  0x4a   : > { %1084 = vmatmul.mubr.bf16.gmra.mrb[16].mxu0 %v3695_v59  ;;  %v1181_v59 = vrot.slane %v4756_v46, 5  ;;  %728 = vmatprep.subr.bf16.mxu1 %v4353_v18  ;;  %v360_v18 = vrot.slane %v358_v27, 5  ;;  %v4278_v27 = vld [vmem:[%s6022_s1 + $0x1c0] ss:$8 sps:$4 sm:$0xff]  }
  0x4b   : > { %3726 = vmatprep.mubr.msk.bf16.mxu0 %vm687_vm0, %v3698_v61  ;;  %1413 = vmatpush1.bf16.msra.mxu0 %v4272_v62  ;;  %v3701_v61 = vcombine.low %v4833_v11, %v4840_v13  ;;  %v333_v62 = vrot.slane %v331_v20, 4  ;;  %v347_v20 = vor.u32 %v346_v6, %v342_v0  ;;  %v6029_v6 = vshrl.u32 %v4690_v23, 16 }
  0x4c   : > { %1925 = vmatprep.subr.bf16.mxu0 %v4277_v63  ;;  %v336_v63 = vrot.slane %v334_v25, 5  ;;  %v1188_v25 = vrot.slane %v4785_v56, 5 }
  0x4d   : > { %v348_v40 = vrot.slane %v347_v20, 4  ;;  %v366_v20 = vrot.slane %v6030_v52, 5 }
  0x4e   : > { %v337_v17 = vor.u32 %v336_v63, %v333_v62  ;;  %v4275_v63 = vld [vmem:[%s6022_s1 + $0x1b0] ss:$8 sps:$4 sm:$0xff]  }
  0x50   : > { %v338_v33 = vrot.slane %v337_v17, 4 }
  0x52   : > { %1094 = vmatmul.mubr.bf16.gmra.mrb[20].mxu0 %v3697_v5  ;;  %v4927_v5 = vld [vmem:[%s4639_s21 + $0x30] sm:$0xee]  ;;  %v343_v53 = vsel %vm4951_vm6, %v338_v33, %v342_v0  ;;  %v374_v33 = vshll.u32 %v4889_v47, 16 }
  0x53   : > { %3727 = vmatprep.mubr.msk.bf16.mxu0 %vm687_vm0, %v3700_v7  ;;  %v350_v7 = vshll.u32 %v4843_v14, 16  ;;  %v4943_v14 = vrot.slane %v1181_v59, 4  ;;  %v3731_v62 = vrot.slane %v4927_v5, 9 }
  0x55   : > { %v352_v49 = vrot.slane %v350_v7, 5 }
  0x57   : > { %v353_v19 = vsel %vm4951_vm6, %v348_v40, %v352_v49  ;;  %v1195_v49 = vrot.slane %v4817_v3, 5 }
  0x58   : > { %v3645_v7 = vcombine.low %v343_v53, %v353_v19  ;;  %v3646_v12 = vcombine.high %v343_v53, %v353_v19  ;;  %v5008_v19 = vsel %vm4870_vm3, %v3731_v62, %v1167_v24  ;;  %v1202_v24 = vrot.slane %v4840_v13, 5 }
  0x5a   : > { %1104 = vmatmul.mubr.bf16.gmra.mrb[24].mxu0 %v3699_v21  ;;  %v4939_v21 = vld [vmem:[%s4639_s21 + $0x40] sm:$0x11]  ;;  %3679 = vmatprep.mubr.msk.bf16.mxu1 %vm687_vm0, %v3646_v12  ;;  %v4283_v12 = vld [vmem:[%s6022_s1 + $0x1d4] ss:$8 sps:$4 sm:$0xff]  }
  0x5b   : > { %3728 = vmatprep.mubr.msk.bf16.mxu0 %vm687_vm0, %v3702_v28  ;;  %v4355_v28 = vld [vmem:[%s6022_s1 + $0x110] ss:$8 sps:$4 sm:$0xff]   ;;  %v398_v17 = vshll.u32 %v4939_v21, 16 }
  0x5c   : > { %729 = vmatpush1.bf16.msra.mxu1 %v4355_v28  ;;  %v4992_v28 = vrot.slane %v1188_v25, 4 }
  0x5f   : > { %745 = vmatmul.mubr.bf16.vlgmr.msra.gmra.mrb[0].mxu1 %v3645_v7 }
  0x62   : > { %1114 = vmatmul.mubr.bf16.gmra.mrb[28].mxu0 %v3701_v61  ;;  %v4965_v61 = vsel %vm4870_vm3, %v1162_v36, %v1163_v15  ;;  %v4280_v36 = vld [vmem:[%s6022_s1 + $0x1c4] ss:$8 sps:$4 sm:$0xff]   ;;  %v357_v15 = vrot.slane %v355_v26, 4  ;;  %v370_v26 = vrot.slane %v6029_v6, 4 }
  0x63   : > { %3789 = vmatprep.mubr.msk.bf16.mxu0 %vm687_vm0, %v3756_v4  ;;  %v1170_v4 = vrot.slane %v4939_v21, 5  ;;  %v3758_v0 = vcombine.high %v4961_v57, %v4965_v61  ;;  %v400_v21 = vrot.slane %v398_v17, 5 }
  0x64   : > { %v361_v53 = vor.u32 %v360_v18, %v357_v15  ;;  %v371_v7 = vor.u32 %v370_v26, %v366_v20  ;;  %v5023_v15 = vld [vmem:[%s4639_s21 + $0x58] sm:$0x11]  ;;  %v392_v18 = vshrl.u32 %v4710_v30, 16 }
  0x65   : > { %v5013_v47 = vsel %vm4870_vm3, %v4885_v45, %v1170_v4  ;;  %v3757_v45 = vcombine.low %v4961_v57, %v4965_v61  ;;  %v388_v4 = vshll.u32 %v4710_v30, 16  ;;  %v381_v61 = vrot.slane %v379_v34, 4 }
  0x66   : > { %v362_v62 = vrot.slane %v361_v53, 4  ;;  %v372_v40 = vrot.slane %v371_v7, 4  ;;  %v3760_v26 = vcombine.high %v5008_v19, %v5013_v47  ;;  %v384_v7 = vrot.slane %v382_v35, 5 }
  0x67   : > { %v390_v6 = vrot.slane %v388_v4, 5  ;;  %v394_v52 = vrot.slane %v392_v18, 4  ;;  %v1177_v34 = vrot.slane %v5023_v15, 5 }
  0x68   : > { %v367_v57 = vsel %vm4951_vm6, %v362_v62, %v366_v20  ;;  %v385_v29 = vor.u32 %v384_v7, %v381_v61  ;;  %v1553_v61 = vshrl.u32 %v4849_v16, 16 }
  0x69   : > { %v395_v35 = vor.u32 %v394_v52, %v390_v6 }
  0x6a   : > { %1429 = vmatmul.mubr.bf16.vlgmr.msra.gmra.mrb[0].mxu0 %v3755_v50  ;;  %v376_v50 = vrot.slane %v374_v33, 5  ;;  %v5037_v33 = vld [vmem:[%s4639_s21 + $0x60] sm:$0xee] }
  0x6b   : > { %1926 = vmatpush1.bf16.msra.mxu0 %v4275_v63  ;;  %3790 = vmatprep.mubr.msk.bf16.mxu0 %vm687_vm0, %v3758_v0  ;;  %v4281_v63 = vld [vmem:[%s6022_s1 + $0x1d0] ss:$8 sps:$4 sm:$0xff]   ;;  %v3732_v0 = vrot.slane %v5019_v22, 9  ;;  %v3733_v52 = vrot.slane %v5037_v33, 9  ;;  %v396_v7 = vrot.slane %v395_v35, 4  ;;  %v405_v35 = vrot.slane %v403_v41, 4 }
  0x6c   : > { %1927 = vmatprep.subr.bf16.mxu0 %v4280_v36  ;;  %v4286_v36 = vld [vmem:[%s6022_s1 + $0x1e4] ss:$8 sps:$4 sm:$0xff]   ;;  %v377_v53 = vsel %vm4951_vm6, %v372_v40, %v376_v50  ;;  %v5058_v40 = vrot.slane %v1195_v49, 4  ;;  %v4284_v50 = vld [vmem:[%s6022_s1 + $0x1e0] ss:$8 sps:$4 sm:$0xff]  }
  0x6d   : > { %v3648_v20 = vcombine.high %v367_v57, %v377_v53  ;;  %v3647_v62 = vcombine.low %v367_v57, %v377_v53  ;;  %v5072_v57 = vld [vmem:[%s4639_s21 + $0x70] sm:$0x11]  ;;  %v386_v53 = vrot.slane %v385_v29, 4  ;;  %v5081_v17 = vsel %vm4870_vm3, %v3732_v0, %v1174_v39 }
  0x6e   : > { %v6031_v29 = vshll.u32 %v4733_v38, 16  ;;  %v401_v39 = vsel %vm4951_vm6, %v396_v7, %v400_v21  ;;  %v3759_v0 = vcombine.low %v5008_v19, %v5013_v47  ;;  %v408_v21 = vrot.slane %v406_v42, 5 }
  0x6f   : > { %1928 = vmatpush1.bf16.msra.mxu0 %v4278_v27  ;;  %v5065_v27 = vrot.slane %v1202_v24, 4  ;;  %3680 = vmatprep.mubr.msk.bf16.mxu1 %vm687_vm0, %v3648_v20  ;;  %v5089_v20 = vld [vmem:[%s4639_s21 + $0x78] sm:$0xee] }
  0x70   : > { %1929 = vmatprep.subr.bf16.mxu0 %v4283_v12  ;;  %v4289_v12 = vld [vmem:[%s6022_s1 + $0x1f4] ss:$8 sps:$4 sm:$0xff]   ;;  %755 = vmatmul.mubr.bf16.gmra.mrb[4].mxu1 %v3647_v62  ;;  %v5092_v62 = vld [vmem:[%s4639_s21 + $0x88] sm:$0x11]  ;;  %v414_v19 = vrot.slane %v6031_v29, 5  ;;  %v3734_v41 = vrot.slane %v5089_v20, 9  ;;  %v409_v37 = vor.u32 %v408_v21, %v405_v35  ;;  %v5137_v35 = vsel %vm4870_vm3, %v3733_v52, %v1181_v59 }
  0x71   : > { %v1191_v29 = vrot.slane %v5092_v62, 5  ;;  %v5145_v21 = vld [vmem:[%s4639_s21 + $0xa0] sm:$0x11] }
  0x72   : > { %1439 = vmatmul.mubr.bf16.gmra.mrb[4].mxu0 %v3757_v45  ;;  %v5086_v45 = vsel %vm4870_vm3, %v4915_v58, %v1177_v34  ;;  %v4287_v58 = vld [vmem:[%s6022_s1 + $0x1f0] ss:$8 sps:$4 sm:$0xff]  }
  0x73   : > { %3791 = vmatprep.mubr.msk.bf16.mxu0 %vm687_vm0, %v3760_v26  ;;  %1930 = vmatpush1.bf16.msra.mxu0 %v4281_v63  ;;  %v6032_v26 = vshrl.u32 %v4733_v38, 16  ;;  %v391_v63 = vsel %vm4951_vm6, %v386_v53, %v390_v6  ;;  %v4292_v6 = vld [vmem:[%s6022_s1 + $0x204] ss:$8 sps:$4 sm:$0xff]   ;;  %v3762_v7 = vcombine.high %v5081_v17, %v5086_v45  ;;  %v3761_v52 = vcombine.low %v5081_v17, %v5086_v45 }
  0x74   : > { %1931 = vmatprep.subr.bf16.mxu0 %v4286_v36  ;;  %v1184_v36 = vrot.slane %v5072_v57, 5  ;;  %v3650_v34 = vcombine.high %v391_v63, %v401_v39  ;;  %v3649_v53 = vcombine.low %v391_v63, %v401_v39  ;;  %v422_v63 = vshll.u32 %v5023_v15, 16  ;;  %v4290_v39 = vld [vmem:[%s6022_s1 + $0x200] ss:$8 sps:$4 sm:$0xff]  }
  0x75   : > { %v418_v47 = vrot.slane %v6032_v26, 4  ;;  %v410_v15 = vrot.slane %v409_v37, 4  ;;  %v429_v37 = vrot.slane %v427_v43, 4  ;;  %v432_v17 = vrot.slane %v430_v51, 5 }
  0x76   : > { %3681 = vmatprep.mubr.msk.bf16.mxu1 %vm687_vm0, %v3650_v34  ;;  %v424_v26 = vrot.slane %v422_v63, 5  ;;  %v5130_v34 = vld [vmem:[%s4639_s21 + $0x90] sm:$0xee]  ;;  %v1198_v43 = vrot.slane %v5145_v21, 5 }
  0x77   : > { %1932 = vmatpush1.bf16.msra.mxu0 %v4284_v50  ;;  %v419_v42 = vor.u32 %v418_v47, %v414_v19  ;;  %v4295_v50 = vld [vmem:[%s6022_s1 + $0x214] ss:$8 sps:$4 sm:$0xff]   ;;  %v6033_v47 = vshll.u32 %v4756_v46, 16  ;;  %v433_v44 = vor.u32 %v432_v17, %v429_v37  ;;  %v5206_v17 = vsel %vm4870_vm3, %v4992_v28, %v1191_v29 }
  0x78   : > { %1933 = vmatprep.subr.bf16.mxu0 %v4289_v12  ;;  %765 = vmatmul.mubr.bf16.gmra.mrb[8].mxu1 %v3649_v53  ;;  %v5148_v53 = vld [vmem:[%s4639_s21 + $0xa8] sm:$0xee] }
  0x79   : > { %v420_v12 = vrot.slane %v419_v42, 4  ;;  %v438_v45 = vrot.slane %v6033_v47, 5 }
  0x7a   : > { %1449 = vmatmul.mubr.bf16.gmra.mrb[8].mxu0 %v3759_v0  ;;  %v5142_v0 = vsel %vm4870_vm3, %v4943_v14, %v1184_v36  ;;  %v4293_v14 = vld [vmem:[%s6022_s1 + $0x210] ss:$8 sps:$4 sm:$0xff]   ;;  %v3735_v36 = vrot.slane %v5130_v34, 9 }
  0x7b   : > { %3792 = vmatprep.mubr.msk.bf16.mxu0 %vm687_vm0, %v3762_v7  ;;  %1934 = vmatpush1.bf16.msra.mxu0 %v4287_v58  ;;  %v6034_v58 = vshrl.u32 %v4756_v46, 16  ;;  %v415_v7 = vsel %vm4951_vm6, %v410_v15, %v414_v19  ;;  %v425_v59 = vsel %vm4951_vm6, %v420_v12, %v424_v26  ;;  %v4298_v19 = vld [vmem:[%s6022_s1 + $0x224] ss:$8 sps:$4 sm:$0xff]   ;;  %v3764_v15 = vcombine.high %v5137_v35, %v5142_v0 }
  0x7c   : > { %1935 = vmatprep.subr.bf16.mxu0 %v4292_v6  ;;  %v5163_v6 = vld [vmem:[%s4639_s21 + $0xb8] sm:$0x11]  ;;  %v3652_v63 = vcombine.high %v415_v7, %v425_v59  ;;  %v3651_v26 = vcombine.low %v415_v7, %v425_v59  ;;  %v446_v12 = vshll.u32 %v5072_v57, 16  ;;  %v4296_v7 = vld [vmem:[%s6022_s1 + $0x220] ss:$8 sps:$4 sm:$0xff]   ;;  %v3736_v59 = vrot.slane %v5148_v53, 9 }
  0x7d   : > { %v442_v42 = vrot.slane %v6034_v58, 4  ;;  %v1205_v58 = vrot.slane %v5163_v6, 5  ;;  %v5194_v57 = vrot.slane %v1553_v61, 5  ;;  %v1556_v61 = vshll.u32 %v4849_v16, 16  ;;  %v4299_v16 = vld [vmem:[%s6022_s1 + $0x230] ss:$8 sps:$4 sm:$0xff]  }
  0x7e   : > { %3682 = vmatprep.mubr.msk.bf16.mxu1 %vm687_vm0, %v3652_v63  ;;  %v448_v47 = vrot.slane %v446_v12, 5  ;;  %v5190_v63 = vld [vmem:[%s4639_s21 + $0x10] sm:$0x33]  ;;  %v3763_v28 = vcombine.low %v5137_v35, %v5142_v0 }
  0x7f   : > { %1936 = vmatpush1.bf16.msra.mxu0 %v4290_v39  ;;  %v443_v51 = vor.u32 %v442_v42, %v438_v45  ;;  %v4301_v39 = vld [vmem:[%s6022_s1 + $0x234] ss:$8 sps:$4 sm:$0xff]   ;;  %v460_v42 = vshll.u32 %v4785_v56, 16 }
  0x80   : > { %1937 = vmatprep.subr.bf16.mxu0 %v4295_v50  ;;  %775 = vmatmul.mubr.bf16.gmra.mrb[12].mxu1 %v3651_v26  ;;  %v434_v50 = vrot.slane %v433_v44, 4  ;;  %v1561_v26 = vrot.slane %v344_v60, 5  ;;  %v1562_v60 = vrot.slane %v340_v55, 6  ;;  %v1567_v55 = vshrl.u32 %v5190_v63, 16 }
  0x81   : > { %v444_v37 = vrot.slane %v443_v51, 4  ;;  %v462_v35 = vrot.slane %v460_v42, 5  ;;  %v1558_v51 = vrot.slane %v1556_v61, 6  ;;  %v1579_v61 = vshll.u32 %v4892_v48, 16 }
  0x82   : > { %1459 = vmatmul.mubr.bf16.gmra.mrb[12].mxu0 %v3761_v52  ;;  %v5201_v52 = vsel %vm4870_vm3, %v3734_v41, %v1188_v25  ;;  %v439_v25 = vsel %vm4951_vm6, %v434_v50, %v438_v45  ;;  %v1576_v50 = vshrl.u32 %v4892_v48, 16  ;;  %v5268_v48 = vld [vmem:[%s4639_s21 + $0x28] sm:$0x33] }
  0x83   : > { %3793 = vmatprep.mubr.msk.bf16.mxu0 %vm687_vm0, %v3764_v15  ;;  %1938 = vmatpush1.bf16.msra.mxu0 %v4293_v14  ;;  %v464_v15 = vshrl.u32 %v4785_v56, 16  ;;  %v449_v41 = vsel %vm4951_vm6, %v444_v37, %v448_v47  ;;  %v453_v14 = vrot.slane %v451_v1, 4  ;;  %v456_v47 = vrot.slane %v454_v8, 5  ;;  %v4326_v56 = vld [vmem:[%s6022_s1 + $0x290] ss:$8 sps:$4 sm:$0xff]  }
  0x84   : > { %1939 = vmatprep.subr.bf16.mxu0 %v4298_v19  ;;  %v3654_v29 = vcombine.high %v439_v25, %v449_v41  ;;  %v4304_v19 = vld [vmem:[%s6022_s1 + $0x244] ss:$8 sps:$4 sm:$0xff]   ;;  %v3653_v45 = vcombine.low %v439_v25, %v449_v41  ;;  %v3766_v10 = vcombine.high %v5201_v52, %v5206_v17  ;;  %v470_v1 = vshll.u32 %v5092_v62, 16 }
  0x85   : > { %v466_v0 = vrot.slane %v464_v15, 4  ;;  %v457_v12 = vor.u32 %v456_v47, %v453_v14  ;;  %v1570_v8 = vshll.u32 %v5190_v63, 16  ;;  %v5249_v62 = vsel %vm4870_vm3, %v3735_v36, %v1195_v49 }
  0x86   : > { %3683 = vmatprep.mubr.msk.bf16.mxu1 %vm687_vm0, %v3654_v29  ;;  %v472_v44 = vrot.slane %v470_v1, 5  ;;  %v484_v41 = vshll.u32 %v4817_v3, 16  ;;  %v477_v29 = vrot.slane %v475_v31, 4  ;;  %v494_v31 = vshll.u32 %v5145_v21, 16 }
  0x87   : > { %1940 = vmatpush1.bf16.msra.mxu0 %v4296_v7  ;;  %v467_v54 = vor.u32 %v466_v0, %v462_v35  ;;  %v458_v37 = vrot.slane %v457_v12, 4  ;;  %v5254_v7 = vsel %vm4870_vm3, %v5058_v40, %v1198_v43  ;;  %v3765_v40 = vcombine.low %v5201_v52, %v5206_v17 }
  0x88   : > { %1941 = vmatprep.subr.bf16.mxu0 %v4301_v39  ;;  %785 = vmatmul.mubr.bf16.gmra.mrb[16].mxu1 %v3653_v45  ;;  %v1569_v39 = vrot.slane %v1567_v55, 5  ;;  %v1572_v43 = vrot.slane %v1570_v8, 6  ;;  %v486_v47 = vrot.slane %v484_v41, 5  ;;  %v3768_v52 = vcombine.high %v5249_v62, %v5254_v7 }
  0x89   : > { %v468_v25 = vrot.slane %v467_v54, 4  ;;  %v463_v49 = vsel %vm4951_vm6, %v458_v37, %v462_v35  ;;  %v1563_v17 = vor.u32 %v1562_v60, %v1561_v26  ;;  %v6040_v0 = vshll.u32 %v4690_v23, 16 }
  0x8a   : > { %1469 = vmatmul.mubr.bf16.gmra.mrb[16].mxu0 %v3763_v28  ;;  %v488_v28 = vshrl.u32 %v4817_v3, 16  ;;  %v5290_v12 = vsel %vm4870_vm3, %v3736_v59, %v1202_v24  ;;  %v1559_v26 = vor.u32 %v1558_v51, %v5194_v57  ;;  %v1578_v60 = vrot.slane %v1576_v50, 5  ;;  %v4345_v3 = vld [vmem:[%s6022_s1 + $0x2b4] ss:$8 sps:$4 sm:$0xff]  }
  0x8b   : > { %3794 = vmatprep.mubr.msk.bf16.mxu0 %vm687_vm0, %v3766_v10  ;;  %1942 = vmatpush1.bf16.msra.mxu0 %v4299_v16  ;;  %v473_v36 = vsel %vm4951_vm6, %v468_v25, %v472_v44  ;;  %v1585_v10 = vrot.slane %v6040_v0, 6  ;;  %v496_v54 = vrot.slane %v494_v31, 5  ;;  %v1581_v8 = vrot.slane %v1579_v61, 6 }
  0x8c   : > { %2342 = vmatprep.subr.bf16.mxu0 %v4304_v19  ;;  %v3656_v16 = vcombine.high %v463_v49, %v473_v36  ;;  %v3655_v14 = vcombine.low %v463_v49, %v473_v36  ;;  %v6039_v19 = vshll.u32 %v4814_v2, 16  ;;  %v490_v35 = vrot.slane %v488_v28, 4 }
  0x8d   : > { %v3767_v2 = vcombine.low %v5249_v62, %v5254_v7  ;;  %v6041_v21 = vshrl.u32 %v4690_v23, 16  ;;  %v1206_v24 = vsel %vm4870_vm3, %v5065_v27, %v1205_v58  ;;  %v1565_v59 = vrot.slane %v1563_v17, 4 }
  0x8e   : > { %v480_v45 = vrot.slane %v6039_v19, 5  ;;  %3684 = vmatprep.mubr.msk.bf16.mxu1 %vm687_vm0, %v3656_v16  ;;  %v491_v1 = vor.u32 %v490_v35, %v486_v47  ;;  %v1573_v57 = vor.u32 %v1572_v43, %v1569_v39  ;;  %v1590_v51 = vshrl.u32 %v5268_v48, 16 }
  0x8f   : > { %v1584_v44 = vrot.slane %v6041_v21, 5  ;;  %v508_v50 = vshll.u32 %v4840_v13, 16  ;;  %v512_v23 = vshrl.u32 %v4840_v13, 16  ;;  %v1560_v61 = vrot.slane %v1559_v26, 4  ;;  %v5335_v21 = vld [vmem:[%s4639_s21 + $0x40] sm:$0x33] }
  0x90   : > { %v481_v55 = vor.u32 %v480_v45, %v477_v29  ;;  %795 = vmatmul.mubr.bf16.gmra.mrb[20].mxu1 %v3655_v14  ;;  %v492_v25 = vrot.slane %v491_v1, 4  ;;  %v1593_v49 = vshll.u32 %v5268_v48, 16  ;;  %v501_v27 = vrot.slane %v6042_v9, 4 }
  0x91   : > { %v510_v16 = vrot.slane %v508_v50, 5  ;;  %v514_v29 = vrot.slane %v512_v23, 4  ;;  %v3770_v14 = vcombine.high %v5290_v12, %v1206_v24  ;;  %v518_v19 = vshll.u32 %v5163_v6, 16 }
  0x92   : > { %1479 = vmatmul.mubr.bf16.gmra.mrb[20].mxu0 %v3765_v40  ;;  %v482_v37 = vrot.slane %v481_v55, 4  ;;  %v497_v7 = vsel %vm4951_vm6, %v492_v25, %v496_v54  ;;  %v6045_v40 = vshll.u32 %v4833_v11, 16  ;;  %v1582_v45 = vor.u32 %v1581_v8, %v1578_v60 }
  0x93   : > { %3795 = vmatprep.mubr.msk.bf16.mxu0 %vm687_vm0, %v3768_v52  ;;  %v515_v35 = vor.u32 %v514_v29, %v510_v16  ;;  %v1574_v11 = vsel %vm5313_vm9, %v1565_v59, %v1573_v57  ;;  %v1586_v52 = vor.u32 %v1585_v10, %v1584_v44  ;;  %v1592_v0 = vrot.slane %v1590_v51, 5 }
  0x94   : > { %v487_v62 = vsel %vm4951_vm6, %v482_v37, %v486_v47  ;;  %v504_v43 = vrot.slane %v6045_v40, 5  ;;  %v520_v31 = vrot.slane %v518_v19, 5  ;;  %v1564_v55 = vsel %vm5313_vm9, %v1560_v61, %v1563_v17 }
  0x95   : > { %v3658_v36 = vcombine.high %v487_v62, %v497_v7  ;;  %v3657_v39 = vcombine.low %v487_v62, %v497_v7  ;;  %v1595_v1 = vrot.slane %v1593_v49, 6  ;;  %v516_v54 = vrot.slane %v515_v35, 4 }
  0x96   : > { %v505_v47 = vor.u32 %v504_v43, %v501_v27  ;;  %v1599_v6 = vshrl.u32 %v4927_v5, 16  ;;  %v1602_v60 = vshll.u32 %v4927_v5, 16  ;;  %v3769_v8 = vcombine.low %v5290_v12, %v1206_v24  ;;  %v5356_v27 = vld [vmem:[%s4639_s21 + $0x58] sm:$0x33] }
  0x97   : > { %3685 = vmatprep.mubr.msk.bf16.mxu1 %vm687_vm0, %v3658_v36  ;;  %v521_v17 = vsel %vm4951_vm6, %v516_v54, %v520_v31  ;;  %v1583_v44 = vrot.slane %v1582_v45, 4  ;;  %v1588_v37 = vrot.slane %v1586_v52, 4  ;;  %v1596_v59 = vor.u32 %v1595_v1, %v1592_v0 }
  0x98   : > { %805 = vmatmul.mubr.bf16.gmra.mrb[24].mxu1 %v3657_v39  ;;  %v506_v26 = vrot.slane %v505_v47, 4  ;;  %v1607_v57 = vrot.slane %v392_v18, 5  ;;  %v1608_v5 = vrot.slane %v388_v4, 6  ;;  %v1601_v24 = vrot.slane %v1599_v6, 5  ;;  %v5381_v6 = vld [vmem:[%s4639_s21 + $0x70] sm:$0x33] }
  0x99   : > { %v1604_v51 = vrot.slane %v1602_v60, 6  ;;  %v1613_v62 = vshrl.u32 %v5335_v21, 16  ;;  %v1616_v32 = vshll.u32 %v5335_v21, 16  ;;  %v1587_v7 = vsel %vm5313_vm9, %v1583_v44, %v1586_v52 }
  0x9a   : > { %1489 = vmatmul.mubr.bf16.gmra.mrb[24].mxu0 %v3767_v2  ;;  %v511_v10 = vsel %vm4951_vm6, %v506_v26, %v510_v16  ;;  %v3816_v2 = vcombine.high %v1564_v55, %v1574_v11  ;;  %v1609_v61 = vor.u32 %v1608_v5, %v1607_v57  ;;  %v1597_v30 = vsel %vm5313_vm9, %v1588_v37, %v1596_v59  ;;  %v4302_v16 = vld [vmem:[%s6022_s1 + $0x240] ss:$8 sps:$4 sm:$0xff]  }
  0x9b   : > { %3796 = vmatprep.mubr.msk.bf16.mxu0 %vm687_vm0, %v3770_v14  ;;  %v3660_v25 = vcombine.high %v511_v10, %v521_v17  ;;  %v3659_v12 = vcombine.low %v511_v10, %v521_v17  ;;  %v1605_v4 = vor.u32 %v1604_v51, %v1601_v24  ;;  %v1615_v18 = vrot.slane %v1613_v62, 5  ;;  %v4308_v62 = vld [vmem:[%s6022_s1 + $0x260] ss:$8 sps:$4 sm:$0xff]  }
  0x9c   : > { %v1618_v49 = vrot.slane %v1616_v32, 6  ;;  %v1622_v36 = vshrl.u32 %v5019_v22, 16  ;;  %v1625_v9 = vshll.u32 %v5019_v22, 16  ;;  %v3815_v39 = vcombine.low %v1564_v55, %v1574_v11  ;;  %v4307_v22 = vld [vmem:[%s6022_s1 + $0x254] ss:$8 sps:$4 sm:$0xff]  }
  0x9d   : > { %3686 = vmatprep.mubr.msk.bf16.mxu1 %vm687_vm0, %v3660_v25  ;;  %v3818_v40 = vcombine.high %v1587_v7, %v1597_v30  ;;  %v1611_v43 = vrot.slane %v1609_v61, 4  ;;  %v1606_v29 = vrot.slane %v1605_v4, 4  ;;  %v6046_v19 = vshrl.u32 %v4733_v38, 16  ;;  %v4313_v32 = vld [vmem:[%s6022_s1 + $0x274] ss:$8 sps:$4 sm:$0xff]  }
  0x9e   : > { %v1619_v14 = vor.u32 %v1618_v49, %v1615_v18  ;;  %v6047_v47 = vshll.u32 %v4733_v38, 16  ;;  %v1624_v11 = vrot.slane %v1622_v36, 5  ;;  %v1627_v52 = vrot.slane %v1625_v9, 6  ;;  %v4305_v38 = vld [vmem:[%s6022_s1 + $0x250] ss:$8 sps:$4 sm:$0xff]  }
  0x9f   : > { %v1630_v45 = vrot.slane %v6046_v19, 5  ;;  %v1636_v0 = vshrl.u32 %v5356_v27, 16  ;;  %v1639_v31 = vshll.u32 %v5356_v27, 16  ;;  %v1645_v55 = vshrl.u32 %v5037_v33, 16 }
  0xa0   : > { %815 = vmatmul.mubr.bf16.gmra.mrb[28].mxu1 %v3659_v12  ;;  %v1631_v35 = vrot.slane %v6047_v47, 6  ;;  %v1648_v1 = vshll.u32 %v5037_v33, 16  ;;  %v1610_v26 = vsel %vm5313_vm9, %v1606_v29, %v1609_v61  ;;  %v1620_v54 = vsel %vm5313_vm9, %v1611_v43, %v1619_v14  ;;  %v4310_v33 = vld [vmem:[%s6022_s1 + $0x264] ss:$8 sps:$4 sm:$0xff]  }
  0xa1   : > { %v1628_v60 = vor.u32 %v1627_v52, %v1624_v11  ;;  %v1638_v10 = vrot.slane %v1636_v0, 5  ;;  %v1641_v17 = vrot.slane %v1639_v31, 6  ;;  %v6048_v37 = vshrl.u32 %v4756_v46, 16  ;;  %v4317_v52 = vld [vmem:[%s6022_s1 + $0x280] ss:$8 sps:$4 sm:$0xff]  }
  0xa2   : > { %1499 = vmatmul.mubr.bf16.gmra.mrb[28].mxu0 %v3769_v8  ;;  %v1632_v8 = vor.u32 %v1631_v35, %v1630_v45  ;;  %v1650_v44 = vrot.slane %v1648_v1, 6  ;;  %v6049_v59 = vshll.u32 %v4756_v46, 16  ;;  %v3817_v5 = vcombine.low %v1587_v7, %v1597_v30  ;;  %v4328_v1 = vld [vmem:[%s6022_s1 + $0x294] ss:$8 sps:$4 sm:$0xff]  }
  0xa3   : > { %3849 = vmatprep.mubr.msk.bf16.mxu0 %vm687_vm0, %v3816_v2  ;;  %v1647_v2 = vrot.slane %v1645_v55, 5  ;;  %v1653_v25 = vrot.slane %v6048_v37, 5  ;;  %v1659_v12 = vshrl.u32 %v5381_v6, 16  ;;  %v1662_v24 = vshll.u32 %v5381_v6, 16 }
  0xa4   : > { %v1654_v57 = vrot.slane %v6049_v59, 6  ;;  %v3820_v51 = vcombine.high %v1610_v26, %v1620_v54  ;;  %v1629_v61 = vrot.slane %v1628_v60, 4  ;;  %v1634_v46 = vrot.slane %v1632_v8, 4 }
  0xa5   : > { %v1642_v4 = vor.u32 %v1641_v17, %v1638_v10  ;;  %v1651_v7 = vor.u32 %v1650_v44, %v1647_v2  ;;  %v1661_v18 = vrot.slane %v1659_v12, 5  ;;  %v1664_v49 = vrot.slane %v1662_v24, 6  ;;  %v4337_v10 = vld [vmem:[%s6022_s1 + $0x2a4] ss:$8 sps:$4 sm:$0xff]  }
  0xa6   : > { %v1655_v30 = vor.u32 %v1654_v57, %v1653_v25  ;;  %v1668_v36 = vshrl.u32 %v5089_v20, 16  ;;  %v1671_v9 = vshll.u32 %v5089_v20, 16  ;;  %v1633_v43 = vsel %vm5313_vm9, %v1629_v61, %v1632_v8  ;;  %v4319_v20 = vld [vmem:[%s6022_s1 + $0x284] ss:$8 sps:$4 sm:$0xff]  }
  0xa7   : > { %v3819_v29 = vcombine.low %v1610_v26, %v1620_v54  ;;  %v1652_v14 = vrot.slane %v1651_v7, 4  ;;  %v1665_v45 = vor.u32 %v1664_v49, %v1661_v18  ;;  %v1676_v0 = vrot.slane %v464_v15, 5  ;;  %v5440_v2 = vld [vmem:[%s4639_s21 + $0xa0] sm:$0x33] }
  0xa8   : > { %v1657_v19 = vrot.slane %v1655_v30, 4  ;;  %v1670_v47 = vrot.slane %v1668_v36, 5  ;;  %v1673_v35 = vrot.slane %v1671_v9, 6  ;;  %v1677_v31 = vrot.slane %v460_v42, 6  ;;  %v4352_v36 = vld [vmem:[%s6022_s1 + $0x2c4] ss:$8 sps:$4 sm:$0xff]  }
  0xa9   : > { %v1691_v60 = vshrl.u32 %v5130_v34, 16  ;;  %v1694_v8 = vshll.u32 %v5130_v34, 16  ;;  %v1699_v25 = vrot.slane %v488_v28, 5  ;;  %v1700_v59 = vrot.slane %v484_v41, 6  ;;  %v4335_v34 = vld [vmem:[%s6022_s1 + $0x2a0] ss:$8 sps:$4 sm:$0xff]  }
  0xaa   : > { %1958 = vmatmul.mubr.bf16.vlgmr.msra.gmra.mrb[0].mxu0 %v3815_v39  ;;  %v4311_v39 = vld [vmem:[%s6022_s1 + $0x270] ss:$8 sps:$4 sm:$0xff]   ;;  %v1666_v26 = vsel %vm5313_vm9, %v1657_v19, %v1665_v45  ;;  %v1674_v54 = vor.u32 %v1673_v35, %v1670_v47  ;;  %v1678_v42 = vor.u32 %v1677_v31, %v1676_v0  ;;  %v1714_v18 = vshrl.u32 %v5148_v53, 16 }
  0xab   : > { %2343 = vmatpush1.bf16.msra.mxu0 %v4302_v16  ;;  %3850 = vmatprep.mubr.msk.bf16.mxu0 %vm687_vm0, %v3818_v40  ;;  %v5405_v40 = vld [vmem:[%s4639_s21 + $0x88] sm:$0x33]  ;;  %v1643_v16 = vsel %vm5313_vm9, %v1634_v46, %v1642_v4  ;;  %v1693_v12 = vrot.slane %v1691_v60, 5  ;;  %v1696_v24 = vrot.slane %v1694_v8, 6  ;;  %v1701_v41 = vor.u32 %v1700_v59, %v1699_v25  ;;  %v4343_v46 = vld [vmem:[%s6022_s1 + $0x2b0] ss:$8 sps:$4 sm:$0xff]  }
  0xac   : > { %2344 = vmatprep.subr.bf16.mxu0 %v4307_v22  ;;  %v1682_v22 = vshrl.u32 %v5405_v40, 16  ;;  %v3822_v11 = vcombine.high %v1633_v43, %v1643_v16  ;;  %v1685_v55 = vshll.u32 %v5405_v40, 16  ;;  %v3821_v17 = vcombine.low %v1633_v43, %v1643_v16  ;;  %v5463_v4 = vld [vmem:[%s4639_s21 + $0xb8] sm:$0x33]  ;;  %v4549_v25 = vld [vmem:[%s4639_s21 + $0x20] sm:$0xff] }
  0xad   : > { %v1675_v37 = vrot.slane %v1674_v54, 4  ;;  %v1680_v57 = vrot.slane %v1678_v42, 4  ;;  %v1697_v61 = vor.u32 %v1696_v24, %v1693_v12  ;;  %v1717_v49 = vshll.u32 %v5148_v53, 16  ;;  %v4350_v53 = vld [vmem:[%s6022_s1 + $0x2c0] ss:$8 sps:$4 sm:$0xff]  }
  0xae   : > { %v1684_v15 = vrot.slane %v1682_v22, 5  ;;  %v1703_v43 = vrot.slane %v1701_v41, 4  ;;  %v1716_v45 = vrot.slane %v1714_v18, 5  ;;  %v1731_v35 = vshll.u32 %v5463_v4, 16 }
  0xaf   : > { %2345 = vmatpush1.bf16.msra.mxu0 %v4305_v38  ;;  %v1656_v38 = vsel %vm5313_vm9, %v1652_v14, %v1655_v30  ;;  %v1679_v28 = vsel %vm5313_vm9, %v1675_v37, %v1678_v42  ;;  %v1698_v16 = vrot.slane %v1697_v61, 4  ;;  %v1728_v14 = vshrl.u32 %v5463_v4, 16  ;;  %v2070_v42 = vld [vmem:[%s4639_s21] sm:$0xcc] }
  0xb0   : > { %2346 = vmatprep.subr.bf16.mxu0 %v4310_v33  ;;  %v1687_v33 = vrot.slane %v1685_v55, 6  ;;  %v3824_v44 = vcombine.high %v1656_v38, %v1666_v26  ;;  %v3823_v9 = vcombine.low %v1656_v38, %v1666_v26  ;;  %v1719_v47 = vrot.slane %v1717_v49, 6  ;;  %v4551_v49 = vld [vmem:[%s4639_s21 + $0x50] sm:$0xff] }
  0xb1   : > { %v3857_v8 = vrot.slane %v2070_v42, 10  ;;  %v2106_v59 = vrot.slane %v4549_v25, 6  ;;  %v2109_v24 = vrot.slane %v5268_v48, 6  ;;  %v2116_v48 = vrot.slane %v5335_v21, 6  ;;  %v2076_v42 = vld [vmem:[%s4639_s21 + $0x90] sm:$0xcc] }
  0xb2   : > { %1968 = vmatmul.mubr.bf16.gmra.mrb[4].mxu0 %v3817_v5  ;;  %v1688_v5 = vor.u32 %v1687_v33, %v1684_v15  ;;  %v1720_v22 = vor.u32 %v1719_v47, %v1716_v45  ;;  %v4548_v15 = vld [vmem:[%s4639_s21 + $0x8] sm:$0xff]  ;;  %v2123_v21 = vrot.slane %v5356_v27, 6  ;;  %v2074_v45 = vld [vmem:[%s4639_s21 + $0x60] sm:$0xcc]  ;;  %v2130_v27 = vrot.slane %v5381_v6, 6 }
  0xb3   : > { %3851 = vmatprep.mubr.msk.bf16.mxu0 %vm687_vm0, %v3820_v51  ;;  %2347 = vmatpush1.bf16.msra.mxu0 %v4308_v62  ;;  %v1705_v51 = vshrl.u32 %v5440_v2, 16  ;;  %v1708_v62 = vshll.u32 %v5440_v2, 16  ;;  %v2108_v12 = vrot.slane %v2106_v59, 4  ;;  %v2137_v6 = vrot.slane %v5405_v40, 6 }
  0xb4   : > { %2348 = vmatprep.subr.bf16.mxu0 %v4313_v32  ;;  %v1689_v32 = vsel %vm5313_vm9, %v1680_v57, %v1688_v5  ;;  %v1721_v55 = vrot.slane %v1720_v22, 4  ;;  %v2071_v57 = vld [vmem:[%s4639_s21 + $0x18] sm:$0xcc]  ;;  %v2144_v40 = vrot.slane %v5440_v2, 6  ;;  %vm2705_vm3 = vcmask 1047559  }
  0xb5   : > { %v1707_v7 = vrot.slane %v1705_v51, 5  ;;  %v1710_v30 = vrot.slane %v1708_v62, 6  ;;  %v3825_v0 = vcombine.low %v1679_v28, %v1689_v32  ;;  %v2110_v62 = vsel %vm5492_vm12, %v2108_v12, %v2109_v24 }
  0xb6   : > { %v2151_v12 = vrot.slane %v5463_v4, 6 }
  0xb7   : > { %2349 = vmatpush1.bf16.msra.mxu0 %v4311_v39  ;;  %v3826_v39 = vcombine.high %v1679_v28, %v1689_v32  ;;  %v1711_v19 = vor.u32 %v1710_v30, %v1707_v7  ;;  %v2072_v28 = vld [vmem:[%s4639_s21 + $0x30] sm:$0xcc] }
  0xb8   : > { %2350 = vmatprep.subr.bf16.mxu0 %v4319_v20  ;;  %v1722_v20 = vrot.slane %v512_v23, 5  ;;  %v1702_v23 = vsel %vm5313_vm9, %v1698_v16, %v1701_v41 }
  0xba   : > { %1978 = vmatmul.mubr.bf16.gmra.mrb[8].mxu0 %v3819_v29  ;;  %v1723_v29 = vrot.slane %v508_v50, 6  ;;  %v1712_v50 = vsel %vm5313_vm9, %v1703_v43, %v1711_v19 }
  0xbb   : > { %3852 = vmatprep.mubr.msk.bf16.mxu0 %vm687_vm0, %v3822_v11  ;;  %2351 = vmatpush1.bf16.msra.mxu0 %v4317_v52  ;;  %v1730_v11 = vrot.slane %v1728_v14, 5  ;;  %v1733_v52 = vrot.slane %v1731_v35, 6  ;;  %v3828_v31 = vcombine.high %v1702_v23, %v1712_v50  ;;  %v3827_v33 = vcombine.low %v1702_v23, %v1712_v50 }
  0xbc   : > { %2352 = vmatprep.subr.bf16.mxu0 %v4328_v1  ;;  %v1724_v13 = vor.u32 %v1723_v29, %v1722_v20  ;;  %v3861_v23 = vrot.slane %v2074_v45, 10 }
  0xbd   : > { %v1734_v38 = vor.u32 %v1733_v52, %v1730_v11  ;;  %v4553_v11 = vld [vmem:[%s4639_s21 + $0x80] sm:$0xff] }
  0xbe   : > { %v1726_v1 = vrot.slane %v1724_v13, 4  ;;  %v1725_v26 = vsel %vm5313_vm9, %v1721_v55, %v1724_v13  ;;  %v2134_v52 = vrot.slane %v4553_v11, 6 }
  0xbf   : > { %2353 = vmatpush1.bf16.msra.mxu0 %v4326_v56  ;;  %v2099_v56 = vrot.slane %v4548_v15, 6  ;;  %v4554_v15 = vld [vmem:[%s4639_s21 + $0x98] sm:$0xff] }
  0xc0   : > { %2354 = vmatprep.subr.bf16.mxu0 %v4337_v10  ;;  %v1735_v54 = vsel %vm5313_vm9, %v1726_v1, %v1734_v38  ;;  %v2136_v38 = vrot.slane %v2134_v52, 4 }
  0xc1   : > { %v3830_v60 = vcombine.high %v1725_v26, %v1735_v54  ;;  %v2101_v10 = vrot.slane %v2099_v56, 4  ;;  %v2100_v58 = vsel %vm5492_vm12, %v3857_v8, %v2099_v56  ;;  %v3829_v5 = vcombine.low %v1725_v26, %v1735_v54 }
  0xc2   : > { %1988 = vmatmul.mubr.bf16.gmra.mrb[12].mxu0 %v3821_v17  ;;  %v2102_v17 = vrot.slane %v5190_v63, 6  ;;  %v2138_v54 = vsel %vm5492_vm12, %v2136_v38, %v2137_v6  ;;  %v2141_v56 = vrot.slane %v4554_v15, 6  ;;  %v3863_v8 = vrot.slane %v2076_v42, 10  ;;  %v4371_v38 = vld [vmem:[%s6024_s3 + $0xa0] ss:$16 sps:$4 sm:$0xff]  }
  0xc3   : > { %3853 = vmatprep.mubr.msk.bf16.mxu0 %vm687_vm0, %v3824_v44  ;;  %2355 = vmatpush1.bf16.msra.mxu0 %v4335_v34  ;;  %v3858_v34 = vrot.slane %v2071_v57, 10  ;;  %v4374_v15 = vld [vmem:[%s6024_s3 + $0xc0] ss:$16 sps:$4 sm:$0xff]   ;;  %v4379_v42 = vld [vmem:[%s6024_s3 + $0xe4] ss:$16 sps:$4 sm:$0xff]  }
  0xc4   : > { %2356 = vmatprep.subr.bf16.mxu0 %v4345_v3  ;;  %v2103_v37 = vsel %vm5492_vm12, %v2101_v10, %v2102_v17  ;;  %v4550_v3 = vld [vmem:[%s4639_s21 + $0x38] sm:$0xff]  ;;  %v2143_v10 = vrot.slane %v2141_v56, 4  ;;  %v2142_v17 = vsel %vm5492_vm12, %v3863_v8, %v2141_v56 }
  0xc5   : > { %v3884_v63 = vcombine.high %v2100_v58, %v2103_v37  ;;  %v2107_v51 = vsel %vm5492_vm12, %v3858_v34, %v2106_v59  ;;  %v2113_v41 = vrot.slane %v4550_v3, 6  ;;  %v3883_v32 = vcombine.low %v2100_v58, %v2103_v37  ;;  %v4555_v37 = vld [vmem:[%s4639_s21 + $0xb0] sm:$0xff]  ;;  %v2077_v59 = vld [vmem:[%s4639_s21 + $0xa8] sm:$0xcc] }
  0xc6   : > { %v3886_v61 = vcombine.high %v2107_v51, %v2110_v62  ;;  %v2145_v58 = vsel %vm5492_vm12, %v2143_v10, %v2144_v40  ;;  %v2148_v25 = vrot.slane %v4555_v37, 6  ;;  %v4382_v40 = vld [vmem:[%s6024_s3 + $0x104] ss:$16 sps:$4 sm:$0xff]   ;;  %v4383_v37 = vld [vmem:[%s6024_s3 + $0x120] ss:$16 sps:$4 sm:$0xff]  }
  0xc7   : > { %2357 = vmatpush1.bf16.msra.mxu0 %v4343_v46  ;;  %v3859_v46 = vrot.slane %v2072_v28, 10  ;;  %v2115_v7 = vrot.slane %v2113_v41, 4 }
  0xc8   : > { %2358 = vmatprep.subr.bf16.mxu0 %v4352_v36  ;;  %v2120_v36 = vrot.slane %v4551_v49, 6  ;;  %v2150_v34 = vrot.slane %v2148_v25, 4 }
  0xc9   : > { %v2114_v30 = vsel %vm5492_vm12, %v3859_v46, %v2113_v41  ;;  %v2117_v18 = vsel %vm5492_vm12, %v2115_v7, %v2116_v48 }
  0xca   : > { %1998 = vmatmul.mubr.bf16.gmra.mrb[16].mxu0 %v3823_v9  ;;  %v2073_v9 = vld [vmem:[%s4639_s21 + $0x48] sm:$0xcc]  ;;  %v3888_v43 = vcombine.high %v2114_v30, %v2117_v18  ;;  %v2122_v20 = vrot.slane %v2120_v36, 4  ;;  %v3887_v47 = vcombine.low %v2114_v30, %v2117_v18  ;;  %v2152_v24 = vsel %vm5492_vm12, %v2150_v34, %v2151_v12  ;;  %v4392_v34 = vld [vmem:[%s6024_s3 + $0x180] ss:$16 sps:$4 sm:$0xff]  }
  0xcb   : > { %3854 = vmatprep.mubr.msk.bf16.mxu0 %vm687_vm0, %v3826_v39  ;;  %2359 = vmatpush1.bf16.msra.mxu0 %v4350_v53  ;;  %v3885_v39 = vcombine.low %v2107_v51, %v2110_v62  ;;  %v3860_v16 = vrot.slane %v2073_v9, 10  ;;  %v4552_v53 = vld [vmem:[%s4639_s21 + $0x68] sm:$0xff]  ;;  %v3895_v51 = vcombine.low %v2142_v17, %v2145_v58  ;;  %v4397_v12 = vld [vmem:[%s6024_s3 + $0x1a4] ss:$16 sps:$4 sm:$0xff]  }
  0xcc   : > { %v2124_v14 = vsel %vm5492_vm12, %v2122_v20, %v2123_v21  ;;  %v2127_v19 = vrot.slane %v4552_v53, 6  ;;  %v4356_v20 = vld [vmem:[%s6024_s3] ss:$16 sps:$4 sm:$0xff]  }
  0xcd   : > { %v2121_v29 = vsel %vm5492_vm12, %v3860_v16, %v2120_v36  ;;  %v4358_v16 = vld [vmem:[%s6024_s3 + $0x4] ss:$16 sps:$4 sm:$0xff]   ;;  %v4359_v53 = vld [vmem:[%s6024_s3 + $0x20] ss:$16 sps:$4 sm:$0xff]  }
  0xce   : > { %v3890_v35 = vcombine.high %v2121_v29, %v2124_v14  ;;  %v2129_v13 = vrot.slane %v2127_v19, 4  ;;  %v2128_v50 = vsel %vm5492_vm12, %v3861_v23, %v2127_v19  ;;  %3132 = vmatprep.subr.bf16.mxu1 %v4358_v16  ;;  %v4406_v16 = vld [vmem:[%s6024_s3 + $0xc] ss:$16 sps:$4 sm:$0xff]  }
  0xcf   : > { %3133 = vmatpush1.bf16.msra.mxu1 %v4356_v20  ;;  %v2489_v20 = vlaneseq }
  0xd0   : > { %v2131_v22 = vsel %vm5492_vm12, %v2129_v13, %v2130_v27  ;;  %v4367_v13 = vld [vmem:[%s6024_s3 + $0x64] ss:$16 sps:$4 sm:$0xff]  }
  0xd1   : > { %v3892_v55 = vcombine.high %v2128_v50, %v2131_v22 }
  0xd2   : > { %2008 = vmatmul.mubr.bf16.gmra.mrb[20].mxu0 %v3825_v0  ;;  %v2075_v0 = vld [vmem:[%s4639_s21 + $0x78] sm:$0xcc] }
  0xd3   : > { %3855 = vmatprep.mubr.msk.bf16.mxu0 %vm687_vm0, %v3828_v31  ;;  %v3889_v31 = vcombine.low %v2121_v29, %v2124_v14  ;;  %v3862_v1 = vrot.slane %v2075_v0, 10  ;;  %v4361_v29 = vld [vmem:[%s6024_s3 + $0x24] ss:$16 sps:$4 sm:$0xff]   ;;  %v4368_v0 = vld [vmem:[%s6024_s3 + $0x80] ss:$16 sps:$4 sm:$0xff]  }
  0xd4   : > { %3134 = vmatprep.subr.bf16.mxu1 %v4361_v29  ;;  %v5721_v29 = vshrl.u32 %v2489_v20, 7 }
  0xd5   : > { %v2135_v26 = vsel %vm5492_vm12, %v3862_v1, %v2134_v52  ;;  %3135 = vmatpush1.bf16.msra.mxu1 %v4359_v53  ;;  %v4370_v52 = vld [vmem:[%s6024_s3 + $0x84] ss:$16 sps:$4 sm:$0xff]  }
  0xd6   : > { %v3893_v57 = vcombine.low %v2135_v26, %v2138_v54  ;;  %v2491_v53 = vsub.s32 0, %v5721_v29 }
  0xda   : > { %2018 = vmatmul.mubr.bf16.gmra.mrb[24].mxu0 %v3827_v33  ;;  %v3891_v33 = vcombine.low %v2128_v50, %v2131_v22  ;;  %v4365_v50 = vld [vmem:[%s6024_s3 + $0x60] ss:$16 sps:$4 sm:$0xff]  }
  0xdb   : > { %3856 = vmatprep.mubr.msk.bf16.mxu0 %vm687_vm0, %v3830_v60  ;;  %v3894_v60 = vcombine.high %v2135_v26, %v2138_v54  ;;  %v4376_v54 = vld [vmem:[%s6024_s3 + $0xc4] ss:$16 sps:$4 sm:$0xff]  }
  0xe2   : > { %2028 = vmatmul.mubr.bf16.gmra.mrb[28].mxu0 %v3829_v5  ;;  %v3896_v5 = vcombine.high %v2142_v17, %v2145_v58  ;;  %v4380_v17 = vld [vmem:[%s6024_s3 + $0x100] ss:$16 sps:$4 sm:$0xff]   ;;  %v4385_v58 = vld [vmem:[%s6024_s3 + $0x124] ss:$16 sps:$4 sm:$0xff]  }
  0xe3   : > { %3917 = vmatprep.mubr.msk.bf16.mxu0 %vm687_vm0, %v3884_v63  ;;  %v3864_v63 = vrot.slane %v2077_v59, 10  ;;  %v4386_v59 = vld [vmem:[%s6024_s3 + $0x140] ss:$16 sps:$4 sm:$0xff]  }
  0xe5   : > { %v2149_v2 = vsel %vm5492_vm12, %v3864_v63, %v2148_v25  ;;  %v4388_v25 = vld [vmem:[%s6024_s3 + $0x144] ss:$16 sps:$4 sm:$0xff]  }
  0xe6   : > { %v3898_v62 = vcombine.high %v2149_v2, %v2152_v24  ;;  %v3897_v3 = vcombine.low %v2149_v2, %v2152_v24  ;;  %v4394_v63 = vld [vmem:[%s6024_s3 + $0x184] ss:$16 sps:$4 sm:$0xff]   ;;  %v4395_v2 = vld [vmem:[%s6024_s3 + $0x1a0] ss:$16 sps:$4 sm:$0xff]  }
  0xe7   : > { %v4400_v24 = vld [vmem:[%s6024_s3 + $0x1c4] ss:$16 sps:$4 sm:$0xff]  }
  0xea   : > { %2375 = vmatmul.mubr.bf16.vlgmr.msra.gmra.mrb[0].mxu0 %v3883_v32 }
  0xeb   : > { %3918 = vmatprep.mubr.msk.bf16.mxu0 %vm687_vm0, %v3886_v61 }
  0xf2   : > { %2385 = vmatmul.mubr.bf16.gmra.mrb[4].mxu0 %v3885_v39 }
  0xf3   : > { %3919 = vmatprep.mubr.msk.bf16.mxu0 %vm687_vm0, %v3888_v43 }
  0xfa   : > { %2395 = vmatmul.mubr.bf16.gmra.mrb[8].mxu0 %v3887_v47  ;;  %v4364_v47 = vld [vmem:[%s6024_s3 + $0x44] ss:$16 sps:$4 sm:$0xff]  }
  0xfb   : > { %3920 = vmatprep.mubr.msk.bf16.mxu0 %vm687_vm0, %v3890_v35  ;;  %v4362_v35 = vld [vmem:[%s6024_s3 + $0x40] ss:$16 sps:$4 sm:$0xff]   ;;  %3136 = vmatprep.subr.bf16.mxu1 %v4364_v47 }
  0xfc   : > { %3137 = vmatpush1.bf16.msra.mxu1 %v4362_v35  ;;  %v2487_v47 = vld [vmem:[%s6023_s2] sm:$0x3]  ;;  %v2495_v35 = vsub.s32 1, %v5721_v29 }
  0xfd   : > { %3138 = vmatprep.subr.bf16.mxu1 %v4367_v13  ;;  %v5730_v13 = vrot.slane %v2487_v47, %v2491_v53 }
 0x100   : > { %3139 = vmatpush1.bf16.msra.mxu1 %v4365_v50 }
 0x101   : > { %3140 = vmatprep.subr.bf16.mxu1 %v4370_v52  ;;  %v5734_v52 = vrot.slane %v2487_v47, %v2495_v35 }
 0x102   : > { %2405 = vmatmul.mubr.bf16.gmra.mrb[12].mxu0 %v3889_v31 }
 0x103   : > { %3921 = vmatprep.mubr.msk.bf16.mxu0 %vm687_vm0, %v3892_v55  ;;  %v4373_v55 = vld [vmem:[%s6024_s3 + $0xa4] ss:$16 sps:$4 sm:$0xff]  }
 0x104   : > { %3141 = vmatpush1.bf16.msra.mxu1 %v4368_v0 }
 0x105   : > { %3142 = vmatprep.subr.bf16.mxu1 %v4373_v55 }
 0x108   : > { %3143 = vmatpush1.bf16.msra.mxu1 %v4371_v38 }
 0x109   : > { %3144 = vmatprep.subr.bf16.mxu1 %v4376_v54 }
 0x10a   : > { %2415 = vmatmul.mubr.bf16.gmra.mrb[16].mxu0 %v3891_v33 }
 0x10b   : > { %3922 = vmatprep.mubr.msk.bf16.mxu0 %vm687_vm0, %v3894_v60  ;;  %v4377_v60 = vld [vmem:[%s6024_s3 + $0xe0] ss:$16 sps:$4 sm:$0xff]  }
 0x10c   : > { %3145 = vmatpush1.bf16.msra.mxu1 %v4374_v15 }
 0x10d   : > { %3146 = vmatprep.subr.bf16.mxu1 %v4379_v42 }
 0x110   : > { %3147 = vmatpush1.bf16.msra.mxu1 %v4377_v60 }
 0x111   : > { %3148 = vmatprep.subr.bf16.mxu1 %v4382_v40 }
 0x112   : > { %2425 = vmatmul.mubr.bf16.gmra.mrb[20].mxu0 %v3893_v57  ;;  %v4391_v57 = vld [vmem:[%s6024_s3 + $0x164] ss:$16 sps:$4 sm:$0xff]  }
 0x113   : > { %3923 = vmatprep.mubr.msk.bf16.mxu0 %vm687_vm0, %v3896_v5  ;;  %v4389_v5 = vld [vmem:[%s6024_s3 + $0x160] ss:$16 sps:$4 sm:$0xff]  }
 0x114   : > { %3149 = vmatpush1.bf16.msra.mxu1 %v4380_v17 }
 0x115   : > { %3150 = vmatprep.subr.bf16.mxu1 %v4385_v58 }
 0x118   : > { %3151 = vmatpush1.bf16.msra.mxu1 %v4383_v37 }
 0x119   : > { %3152 = vmatprep.subr.bf16.mxu1 %v4388_v25 }
 0x11a   : > { %2435 = vmatmul.mubr.bf16.gmra.mrb[24].mxu0 %v3895_v51  ;;  %v4398_v51 = vld [vmem:[%s6024_s3 + $0x1c0] ss:$16 sps:$4 sm:$0xff]  }
 0x11b   : > { %3924 = vmatprep.mubr.msk.bf16.mxu0 %vm687_vm0, %v3898_v62  ;;  %v4403_v62 = vld [vmem:[%s6024_s3 + $0x1e4] ss:$16 sps:$4 sm:$0xff]   ;;  %vm2699_vm0 = vcmask 1044484  }
 0x11c   : > { %3153 = vmatpush1.bf16.msra.mxu1 %v4386_v59 }
 0x11d   : > { %3154 = vmatprep.subr.bf16.mxu1 %v4391_v57 }
 0x120   : > { %3155 = vmatpush1.bf16.msra.mxu1 %v4389_v5 }
 0x121   : > { %3156 = vmatprep.subr.bf16.mxu1 %v4394_v63 }
 0x122   : > { %2445 = vmatmul.mubr.bf16.gmra.mrb[28].mxu0 %v3897_v3  ;;  %v4401_v3 = vld [vmem:[%s6024_s3 + $0x1e0] ss:$16 sps:$4 sm:$0xff]  }
 0x124   : > { %3157 = vmatpush1.bf16.msra.mxu1 %v4392_v34 }
 0x125   : > { %3158 = vmatprep.subr.bf16.mxu1 %v4397_v12 }
 0x128   : > { %3159 = vmatpush1.bf16.msra.mxu1 %v4395_v2 }
 0x129   : > { %3160 = vmatprep.subr.bf16.mxu1 %v4400_v24 }
 0x12c   : > { %3161 = vmatpush1.bf16.msra.mxu1 %v4398_v51 }
 0x12d   : > { %3162 = vmatprep.subr.bf16.mxu1 %v4403_v62 }
 0x130   : > { %3163 = vmatpush1.bf16.msra.mxu1 %v4401_v3 }
 0x131   : > { %3173 = vmatprep.subr.bf16.mxu1 %v4406_v16 }
 0x132   : > { %v5558_v41 = vpop.f32.mrb[0].mxu1 }
 0x133   : > { %v5560_v28 = vpop.f32.mrb[1].mxu1 }
 0x134   : > { %v5562_v4 = vpop.f32.mrb[2].mxu1 }
 0x135   : > { %v5564_v32 = vpop.f32.mrb[3].mxu1 }
 0x143   : > { %v5566_v61 = vpop.f32.mrb[4].mxu1 }
 0x144   : > { %v5568_v46 = vpop.f32.mrb[5].mxu1 }
 0x145   : > { %v5570_v44 = vpop.f32.mrb[6].mxu1 }
 0x146   : > { %v5572_v7 = vpop.f32.mrb[7].mxu1 }
 0x14b   : > { %v5574_v48 = vpop.f32.mrb[8].mxu1 }
 0x14c   : > { %v5576_v30 = vpop.f32.mrb[9].mxu1 }
 0x14d   : > { %v5578_v18 = vpop.f32.mrb[10].mxu1 }
 0x14e   : > { %v5580_v49 = vpop.f32.mrb[11].mxu1 }
 0x153   : > { %v5582_v36 = vpop.f32.mrb[12].mxu1 }
 0x154   : > { %v5584_v9 = vpop.f32.mrb[13].mxu1 }
 0x155   : > { %v5586_v39 = vpop.f32.mrb[14].mxu1 }
 0x156   : > { %v5588_v43 = vpop.f32.mrb[15].mxu1 }
 0x15b   : > { %v5596_v21 = vpop.f32.mrb[16].mxu1 }
 0x15c   : > { %v5601_v14 = vpop.f32.mrb[17].mxu1 }
 0x15d   : > { %v5606_v19 = vpop.f32.mrb[18].mxu1 }
 0x15e   : > { %v5608_v45 = vpop.f32.mrb[19].mxu1 }
 0x163   : > { %v5616_v23 = vpop.f32.mrb[20].mxu1 }
 0x164   : > { %v5621_v27 = vpop.f32.mrb[21].mxu1 }
 0x165   : > { %v5626_v22 = vpop.f32.mrb[22].mxu1 }
 0x166   : > { %v5628_v11 = vpop.f32.mrb[23].mxu1 }
 0x16b   : > { %v5636_v31 = vpop.f32.mrb[24].mxu1 }
 0x16c   : > { %v5641_v1 = vpop.f32.mrb[25].mxu1 }
 0x16d   : > { %v5646_v6 = vpop.f32.mrb[26].mxu1 }
 0x16e   : > { %v5648_v26 = vpop.f32.mrb[27].mxu1 }
 0x173   : > { %v5656_v56 = vpop.f32.mrb[28].mxu1 }
 0x174   : > { %v5661_v33 = vpop.f32.mrb[29].mxu1 }
 0x175   : > { %v5666_v8 = vpop.f32.mrb[30].mxu1 }
 0x176   : > { %v5668_v10 = vpop.f32.mrb[31].mxu1 }
 0x1bd   : > { %v2376_v50 = vpop.f32.mrb[0].mxu0 }
 0x1be   : > { %v4068_v0 = vadd.f32 %v2376_v50, %v5558_v41  ;;  %v2378_v55 = vpop.f32.mrb[1].mxu0 }
 0x1bf   : > { %v4069_v38 = vadd.f32 %v2378_v55, %v5560_v28  ;;  %v2380_v54 = vpop.f32.mrb[2].mxu0 }
 0x1c0   : > { %v2499_v15 = vadd.f32 %v4068_v0, %v5730_v13  ;;  %v4070_v42 = vadd.f32 %v2380_v54, %v5562_v4  ;;  %v2382_v60 = vpop.f32.mrb[3].mxu0 }
 0x1c1   : > { %v2500_v40 = vadd.f32 %v4069_v38, %v5734_v52  ;;  %v4071_v17 = vadd.f32 %v2382_v60, %v5564_v32 }
 0x1c2   : > { %4484 = vtanh.f32 %v2499_v15  ;;  %v2501_v58 = vadd.f32 %v4070_v42, %v5730_v13 }
 0x1c3   : > { %4486 = vtanh.f32 %v2500_v40  ;;  %v2502_v37 = vadd.f32 %v4071_v17, %v5734_v52 }
 0x1c4   : > { %4488 = vtanh.f32 %v2501_v58 }
 0x1c5   : > { %4490 = vtanh.f32 %v2502_v37  ;;  %v2386_v41 = vpop.f32.mrb[4].mxu0 }
 0x1c6   : > { %v4072_v28 = vadd.f32 %v2386_v41, %v5566_v61  ;;  %v2388_v25 = vpop.f32.mrb[5].mxu0 }
 0x1c7   : > { %v4073_v59 = vadd.f32 %v2388_v25, %v5568_v46  ;;  %v2390_v4 = vpop.f32.mrb[6].mxu0 }
 0x1c8   : > { %v2503_v57 = vadd.f32 %v4072_v28, %v5730_v13  ;;  %v4074_v5 = vadd.f32 %v2390_v4, %v5570_v44  ;;  %v2392_v32 = vpop.f32.mrb[7].mxu0 }
 0x1c9   : > { %v2504_v63 = vadd.f32 %v4073_v59, %v5734_v52  ;;  %v4075_v34 = vadd.f32 %v2392_v32, %v5572_v7 }
 0x1ca   : > { %4492 = vtanh.f32 %v2503_v57  ;;  %v2505_v12 = vadd.f32 %v4074_v5, %v5730_v13 }
 0x1cb   : > { %4494 = vtanh.f32 %v2504_v63  ;;  %v2506_v2 = vadd.f32 %v4075_v34, %v5734_v52 }
 0x1cc   : > { %v4485_v61 = vpop.eup %4484  ;;  %4496 = vtanh.f32 %v2505_v12 }
 0x1cd   : > { %v4487_v24 = vpop.eup %4486  ;;  %4498 = vtanh.f32 %v2506_v2  ;;  %v2396_v46 = vpop.f32.mrb[8].mxu0 }
 0x1ce   : > { %v4489_v51 = vpop.eup %4488  ;;  %v4076_v62 = vadd.f32 %v2396_v46, %v5574_v48  ;;  %v2398_v44 = vpop.f32.mrb[9].mxu0 }
 0x1cf   : > { %v4491_v3 = vpop.eup %4490  ;;  %v2565_v16 = vadd.f32 %v4489_v51, %v4485_v61  ;;  %v4077_v20 = vadd.f32 %v2398_v44, %v5576_v30  ;;  %v2400_v7 = vpop.f32.mrb[10].mxu0 }
 0x1d0   : > { %v2572_v47 = vadd.f32 %v4491_v3, %v4487_v24  ;;  %v2507_v50 = vadd.f32 %v4076_v62, %v5730_v13  ;;  %v4078_v0 = vadd.f32 %v2400_v7, %v5578_v18  ;;  %v2402_v55 = vpop.f32.mrb[11].mxu0 }
 0x1d1   : > { %v2566_v38 = vrot.slane %v2565_v16, 4  ;;  %v2508_v54 = vadd.f32 %v4077_v20, %v5734_v52  ;;  %v4079_v15 = vadd.f32 %v2402_v55, %v5580_v49 }
 0x1d2   : > { %v2573_v42 = vrot.slane %v2572_v47, 4  ;;  %4500 = vtanh.f32 %v2507_v50  ;;  %v2509_v48 = vadd.f32 %v4078_v0, %v5730_v13 }
 0x1d3   : > { %v2567_v60 = vadd.f32 %v2566_v38, %v2565_v16  ;;  %4502 = vtanh.f32 %v2508_v54  ;;  %v2510_v30 = vadd.f32 %v4079_v15, %v5734_v52 }
 0x1d4   : > { %v4493_v40 = vpop.eup %4492  ;;  %v2574_v17 = vadd.f32 %v2573_v42, %v2572_v47  ;;  %4504 = vtanh.f32 %v2509_v48 }
 0x1d5   : > { %v4495_v58 = vpop.eup %4494  ;;  %v2568_v37 = vrot.slane %v2567_v60, 2  ;;  %4506 = vtanh.f32 %v2510_v30  ;;  %v2406_v18 = vpop.f32.mrb[12].mxu0 }
 0x1d6   : > { %v4497_v41 = vpop.eup %4496  ;;  %v2575_v28 = vrot.slane %v2574_v17, 2  ;;  %v4080_v25 = vadd.f32 %v2406_v18, %v5582_v36  ;;  %v2408_v49 = vpop.f32.mrb[13].mxu0 }
 0x1d7   : > { %v4499_v59 = vpop.eup %4498  ;;  %v2569_v4 = vadd.f32 %v2568_v37, %v2567_v60  ;;  %v2579_v57 = vadd.f32 %v4497_v41, %v4493_v40  ;;  %v4081_v5 = vadd.f32 %v2408_v49, %v5584_v9  ;;  %v2410_v32 = vpop.f32.mrb[14].mxu0 }
 0x1d8   : > { %v2586_v63 = vadd.f32 %v4499_v59, %v4495_v58  ;;  %v2511_v34 = vadd.f32 %v4080_v25, %v5730_v13  ;;  %v4082_v12 = vadd.f32 %v2410_v32, %v5586_v39  ;;  %v2412_v2 = vpop.f32.mrb[15].mxu0  ;;  %v2576_v51 = vadd.f32 %v2575_v28, %v2574_v17 }
 0x1d9   : > { %v2580_v61 = vrot.slane %v2579_v57, 4  ;;  %v2512_v24 = vadd.f32 %v4081_v5, %v5734_v52  ;;  %v4083_v46 = vadd.f32 %v2412_v2, %v5588_v43  ;;  %v2570_v44 = vrot.slane %v2569_v4, 1 }
 0x1da   : > { %v2587_v36 = vrot.slane %v2586_v63, 4  ;;  %4508 = vtanh.f32 %v2511_v34  ;;  %v2513_v62 = vadd.f32 %v4082_v12, %v5730_v13  ;;  %v2577_v0 = vrot.slane %v2576_v51, 1 }
 0x1db   : > { %v2581_v3 = vadd.f32 %v2580_v61, %v2579_v57  ;;  %4510 = vtanh.f32 %v2512_v24  ;;  %v2514_v9 = vadd.f32 %v4083_v46, %v5734_v52  ;;  %v2571_v15 = vadd.f32 %v2570_v44, %v2569_v4 }
 0x1dc   : > { %v4501_v16 = vpop.eup %4500  ;;  %v2588_v20 = vadd.f32 %v2587_v36, %v2586_v63  ;;  %4512 = vtanh.f32 %v2513_v62  ;;  %v2578_v63 = vadd.f32 %v2577_v0, %v2576_v51 }
 0x1dd   : > { %v4503_v39 = vpop.eup %4502  ;;  %v2582_v7 = vrot.slane %v2581_v3, 2  ;;  %4514 = vtanh.f32 %v2514_v9  ;;  %v2416_v47 = vpop.f32.mrb[16].mxu0 }
 0x1de   : > { %v4505_v50 = vpop.eup %4504  ;;  %v2589_v43 = vrot.slane %v2588_v20, 2  ;;  %v4084_v55 = vadd.f32 %v2416_v47, %v5596_v21  ;;  %v2418_v38 = vpop.f32.mrb[17].mxu0 }
 0x1df   : > { %v4507_v54 = vpop.eup %4506  ;;  %v2583_v42 = vadd.f32 %v2582_v7, %v2581_v3  ;;  %v2593_v48 = vadd.f32 %v4505_v50, %v4501_v16  ;;  %v4085_v60 = vadd.f32 %v2418_v38, %v5601_v14  ;;  %v2420_v30 = vpop.f32.mrb[18].mxu0 }
 0x1e0   : > { %v2590_v40 = vadd.f32 %v2589_v43, %v2588_v20  ;;  %v2600_v17 = vadd.f32 %v4507_v54, %v4503_v39  ;;  %v2515_v58 = vadd.f32 %v4084_v55, %v5730_v13  ;;  %v4086_v37 = vadd.f32 %v2420_v30, %v5606_v19  ;;  %v2422_v18 = vpop.f32.mrb[19].mxu0 }
 0x1e1   : > { %v2584_v41 = vrot.slane %v2583_v42, 1  ;;  %v2594_v28 = vrot.slane %v2593_v48, 4  ;;  %v2516_v21 = vadd.f32 %v4085_v60, %v5734_v52  ;;  %v4087_v25 = vadd.f32 %v2422_v18, %v5608_v45 }
 0x1e2   : > { %v2591_v49 = vrot.slane %v2590_v40, 1  ;;  %v2601_v59 = vrot.slane %v2600_v17, 4  ;;  %4516 = vtanh.f32 %v2515_v58  ;;  %v2517_v4 = vadd.f32 %v4086_v37, %v5730_v13 }
 0x1e3   : > { %v2585_v14 = vadd.f32 %v2584_v41, %v2583_v42  ;;  %v2595_v57 = vadd.f32 %v2594_v28, %v2593_v48  ;;  %4518 = vtanh.f32 %v2516_v21  ;;  %v2518_v5 = vadd.f32 %v4087_v25, %v5734_v52 }
 0x1e4   : > { %v4509_v32 = vpop.eup %4508  ;;  %v2592_v19 = vadd.f32 %v2591_v49, %v2590_v40  ;;  %v2602_v34 = vadd.f32 %v2601_v59, %v2600_v17  ;;  %4520 = vtanh.f32 %v2517_v4 }
 0x1e5   : > { %v4511_v12 = vpop.eup %4510  ;;  %v2596_v2 = vrot.slane %v2595_v57, 2  ;;  %4522 = vtanh.f32 %v2518_v5  ;;  %v2426_v61 = vpop.f32.mrb[20].mxu0  ;;  %v2694_v45 = vsel %vm2693_vm13, %v2585_v14, %v2571_v15 }
 0x1e6   : > { %v4513_v24 = vpop.eup %4512  ;;  %v2603_v46 = vrot.slane %v2602_v34, 2  ;;  %v4088_v36 = vadd.f32 %v2426_v61, %v5616_v23  ;;  %v2428_v62 = vpop.f32.mrb[21].mxu0  ;;  %v2707_v44 = vsel %vm2693_vm13, %v2592_v19, %v2578_v63 }
 0x1e7   : > { %v4515_v3 = vpop.eup %4514  ;;  %v2597_v9 = vadd.f32 %v2596_v2, %v2595_v57  ;;  %v2607_v16 = vadd.f32 %v4513_v24, %v4509_v32  ;;  %v4089_v51 = vadd.f32 %v2428_v62, %v5621_v27  ;;  %v2430_v20 = vpop.f32.mrb[22].mxu0 }
 0x1e8   : > { %v2604_v39 = vadd.f32 %v2603_v46, %v2602_v34  ;;  %v2614_v7 = vadd.f32 %v4515_v3, %v4511_v12  ;;  %v2519_v47 = vadd.f32 %v4088_v36, %v5730_v13  ;;  %v4090_v50 = vadd.f32 %v2430_v20, %v5626_v22  ;;  %v2432_v0 = vpop.f32.mrb[23].mxu0 }
 0x1e9   : > { %v2598_v43 = vrot.slane %v2597_v9, 1  ;;  %v2608_v55 = vrot.slane %v2607_v16, 4  ;;  %v2520_v23 = vadd.f32 %v4089_v51, %v5734_v52  ;;  %v4091_v38 = vadd.f32 %v2432_v0, %v5628_v11 }
 0x1ea   : > { %v2605_v54 = vrot.slane %v2604_v39, 1  ;;  %v2615_v15 = vrot.slane %v2614_v7, 4  ;;  %4524 = vtanh.f32 %v2519_v47  ;;  %v2521_v27 = vadd.f32 %v4090_v50, %v5730_v13 }
 0x1eb   : > { %v2599_v42 = vadd.f32 %v2598_v43, %v2597_v9  ;;  %v2609_v48 = vadd.f32 %v2608_v55, %v2607_v16  ;;  %4526 = vtanh.f32 %v2520_v23  ;;  %v2522_v60 = vadd.f32 %v4091_v38, %v5734_v52 }
 0x1ec   : > { %v4517_v30 = vpop.eup %4516  ;;  %v2606_v40 = vadd.f32 %v2605_v54, %v2604_v39  ;;  %v2616_v22 = vadd.f32 %v2615_v15, %v2614_v7  ;;  %4528 = vtanh.f32 %v2521_v27 }
 0x1ed   : > { %v4519_v17 = vpop.eup %4518  ;;  %v2610_v58 = vrot.slane %v2609_v48, 2  ;;  %4530 = vtanh.f32 %v2522_v60  ;;  %v2436_v37 = vpop.f32.mrb[24].mxu0  ;;  %v2696_v11 = vsel %vm2695_vm14, %v2599_v42, %v2694_v45 }
 0x1ee   : > { %v4521_v18 = vpop.eup %4520  ;;  %v2617_v41 = vrot.slane %v2616_v22, 2  ;;  %v4092_v28 = vadd.f32 %v2436_v37, %v5636_v31  ;;  %v2438_v21 = vpop.f32.mrb[25].mxu0  ;;  %v2708_v25 = vsel %vm2695_vm14, %v2606_v40, %v2707_v44 }
 0x1ef   : > { %v4523_v49 = vpop.eup %4522  ;;  %v2611_v59 = vadd.f32 %v2610_v58, %v2609_v48  ;;  %v2621_v4 = vadd.f32 %v4521_v18, %v4517_v30  ;;  %v4093_v14 = vadd.f32 %v2438_v21, %v5641_v1  ;;  %v2440_v57 = vpop.f32.mrb[26].mxu0 }
 0x1f0   : > { %v2618_v5 = vadd.f32 %v2617_v41, %v2616_v22  ;;  %v2628_v32 = vadd.f32 %v4523_v49, %v4519_v17  ;;  %v2523_v63 = vadd.f32 %v4092_v28, %v5730_v13  ;;  %v4094_v19 = vadd.f32 %v2440_v57, %v5646_v6  ;;  %v2442_v34 = vpop.f32.mrb[27].mxu0 }
 0x1f1   : > { %v2612_v12 = vrot.slane %v2611_v59, 1  ;;  %v2622_v2 = vrot.slane %v2621_v4, 4  ;;  %v2524_v31 = vadd.f32 %v4093_v14, %v5734_v52  ;;  %v4095_v61 = vadd.f32 %v2442_v34, %v5648_v26 }
 0x1f2   : > { %v2619_v45 = vrot.slane %v2618_v5, 1  ;;  %v2629_v24 = vrot.slane %v2628_v32, 4  ;;  %4532 = vtanh.f32 %v2523_v63  ;;  %v2525_v1 = vadd.f32 %v4094_v19, %v5730_v13 }
 0x1f3   : > { %v2613_v46 = vadd.f32 %v2612_v12, %v2611_v59  ;;  %v2623_v36 = vadd.f32 %v2622_v2, %v2621_v4  ;;  %4534 = vtanh.f32 %v2524_v31  ;;  %v2526_v62 = vadd.f32 %v4095_v61, %v5734_v52 }
 0x1f4   : > { %v4525_v44 = vpop.eup %4524  ;;  %v2630_v3 = vadd.f32 %v2629_v24, %v2628_v32  ;;  %4536 = vtanh.f32 %v2525_v1  ;;  %v2620_v6 = vadd.f32 %v2619_v45, %v2618_v5 }
 0x1f5   : > { %v4527_v9 = vpop.eup %4526  ;;  %v2624_v16 = vrot.slane %v2623_v36, 2  ;;  %4538 = vtanh.f32 %v2526_v62  ;;  %v2446_v51 = vpop.f32.mrb[28].mxu0  ;;  %v2698_v26 = vsel %vm2697_vm15, %v2613_v46, %v2696_v11 }
 0x1f6   : > { %v4529_v20 = vpop.eup %4528  ;;  %v2631_v39 = vrot.slane %v2630_v3, 2  ;;  %v4096_v7 = vadd.f32 %v2446_v51, %v5656_v56  ;;  %v2448_v47 = vpop.f32.mrb[29].mxu0  ;;  %v2709_v50 = vsel %vm2697_vm15, %v2620_v6, %v2708_v25 }
 0x1f7   : > { %v4531_v0 = vpop.eup %4530  ;;  %v2625_v43 = vadd.f32 %v2624_v16, %v2623_v36  ;;  %v2635_v55 = vadd.f32 %v4529_v20, %v4525_v44  ;;  %v4097_v23 = vadd.f32 %v2448_v47, %v5661_v33  ;;  %v2450_v38 = vpop.f32.mrb[30].mxu0 }
 0x1f8   : > { %v2642_v54 = vadd.f32 %v4531_v0, %v4527_v9  ;;  %v2527_v15 = vadd.f32 %v4096_v7, %v5730_v13  ;;  %v4098_v27 = vadd.f32 %v2450_v38, %v5666_v8  ;;  %v2452_v42 = vpop.f32.mrb[31].mxu0  ;;  %v2632_v48 = vadd.f32 %v2631_v39, %v2630_v3 }
 0x1f9   : > { %v2626_v60 = vrot.slane %v2625_v43, 1  ;;  %v2636_v30 = vrot.slane %v2635_v55, 4  ;;  %v2528_v56 = vadd.f32 %v4097_v23, %v5734_v52  ;;  %v4099_v40 = vadd.f32 %v2452_v42, %v5668_v10 }
 0x1fa   : > { %v2643_v22 = vrot.slane %v2642_v54, 4  ;;  %4540 = vtanh.f32 %v2527_v15  ;;  %v2529_v17 = vadd.f32 %v4098_v27, %v5730_v13  ;;  %v2633_v33 = vrot.slane %v2632_v48, 1 }
 0x1fb   : > { %v2627_v58 = vadd.f32 %v2626_v60, %v2625_v43  ;;  %v2637_v37 = vadd.f32 %v2636_v30, %v2635_v55  ;;  %4542 = vtanh.f32 %v2528_v56  ;;  %v2530_v11 = vadd.f32 %v4099_v40, %v5734_v52 }
 0x1fc   : > { %v4533_v18 = vpop.eup %4532  ;;  %v2644_v8 = vadd.f32 %v2643_v22, %v2642_v54  ;;  %4544 = vtanh.f32 %v2529_v17  ;;  %v2634_v41 = vadd.f32 %v2633_v33, %v2632_v48  ;;  %v4404_v33 = vld [vmem:[%s6024_s3 + $0x8] ss:$16 sps:$4 sm:$0xff]  }
 0x1fd   : > { %v4535_v28 = vpop.eup %4534  ;;  %v2638_v21 = vrot.slane %v2637_v37, 2  ;;  %4546 = vtanh.f32 %v2530_v11  ;;  %v2700_v25 = vsel %vm2699_vm0, %v2627_v58, %v2698_v26  ;;  %v4407_v11 = vld [vmem:[%s6024_s3 + $0x28] ss:$16 sps:$4 sm:$0xff]  }
 0x1fe   : > { %v4537_v10 = vpop.eup %4536  ;;  %v2645_v49 = vrot.slane %v2644_v8, 2  ;;  %v2710_v59 = vsel %vm2699_vm0, %v2634_v41, %v2709_v50  ;;  %v4415_v41 = vld [vmem:[%s6024_s3 + $0x6c] ss:$16 sps:$4 sm:$0xff]  }
 0x1ff   : > { %v4539_v13 = vpop.eup %4538  ;;  %v2639_v4 = vadd.f32 %v2638_v21, %v2637_v37  ;;  %v2649_v14 = vadd.f32 %v4537_v10, %v4533_v18  ;;  %v4409_v37 = vld [vmem:[%s6024_s3 + $0x2c] ss:$16 sps:$4 sm:$0xff]  }
 0x200   : > { %v2656_v57 = vadd.f32 %v4539_v13, %v4535_v28  ;;  %v2646_v5 = vadd.f32 %v2645_v49, %v2644_v8  ;;  %v4412_v18 = vld [vmem:[%s6024_s3 + $0x4c] ss:$16 sps:$4 sm:$0xff]   ;;  %v4410_v8 = vld [vmem:[%s6024_s3 + $0x48] ss:$16 sps:$4 sm:$0xff]  }
 0x201   : > { %v2640_v32 = vrot.slane %v2639_v4, 1  ;;  %v2650_v52 = vrot.slane %v2649_v14, 4  ;;  %v4413_v28 = vld [vmem:[%s6024_s3 + $0x68] ss:$16 sps:$4 sm:$0xff]   ;;  %v4418_v21 = vld [vmem:[%s6024_s3 + $0x8c] ss:$16 sps:$4 sm:$0xff]  }
 0x202   : > { %v2657_v63 = vrot.slane %v2656_v57, 4  ;;  %v2647_v19 = vrot.slane %v2646_v5, 1  ;;  %v4421_v10 = vld [vmem:[%s6024_s3 + $0xac] ss:$16 sps:$4 sm:$0xff]   ;;  %v4419_v49 = vld [vmem:[%s6024_s3 + $0xa8] ss:$16 sps:$4 sm:$0xff]  }
 0x203   : > { %v2651_v34 = vadd.f32 %v2650_v52, %v2649_v14  ;;  %v2641_v12 = vadd.f32 %v2640_v32, %v2639_v4  ;;  %v4422_v13 = vld [vmem:[%s6024_s3 + $0xc8] ss:$16 sps:$4 sm:$0xff]   ;;  %v4427_v4 = vld [vmem:[%s6024_s3 + $0xec] ss:$16 sps:$4 sm:$0xff]  }
 0x204   : > { %v4541_v2 = vpop.eup %4540  ;;  %v2648_v31 = vadd.f32 %v2647_v19, %v2646_v5  ;;  %v2658_v61 = vadd.f32 %v2657_v63, %v2656_v57  ;;  %v4425_v14 = vld [vmem:[%s6024_s3 + $0xe8] ss:$16 sps:$4 sm:$0xff]   ;;  %v4430_v57 = vld [vmem:[%s6024_s3 + $0x10c] ss:$16 sps:$4 sm:$0xff]  }
 0x205   : > { %v4543_v45 = vpop.eup %4542  ;;  %v2652_v24 = vrot.slane %v2651_v34, 2  ;;  %v2702_v1 = vsel %vm2701_vm1, %v2641_v12, %v2700_v25  ;;  %v4416_v25 = vld [vmem:[%s6024_s3 + $0x88] ss:$16 sps:$4 sm:$0xff]   ;;  %v4433_v32 = vld [vmem:[%s6024_s3 + $0x12c] ss:$16 sps:$4 sm:$0xff]  }
 0x206   : > { %v4545_v46 = vpop.eup %4544  ;;  %v2659_v36 = vrot.slane %v2658_v61, 2  ;;  %v2711_v62 = vsel %vm2701_vm1, %v2648_v31, %v2710_v59  ;;  %v4424_v59 = vld [vmem:[%s6024_s3 + $0xcc] ss:$16 sps:$4 sm:$0xff]   ;;  %v4428_v5 = vld [vmem:[%s6024_s3 + $0x108] ss:$16 sps:$4 sm:$0xff]  }
 0x207   : > { %v4547_v44 = vpop.eup %4546  ;;  %v2663_v3 = vadd.f32 %v4545_v46, %v4541_v2  ;;  %v2653_v6 = vadd.f32 %v2652_v24, %v2651_v34  ;;  %v4431_v52 = vld [vmem:[%s6024_s3 + $0x128] ss:$16 sps:$4 sm:$0xff]   ;;  %v4436_v63 = vld [vmem:[%s6024_s3 + $0x14c] ss:$16 sps:$4 sm:$0xff]  }
 0x208   : > { %v2670_v9 = vadd.f32 %v4547_v44, %v4543_v45  ;;  %v2660_v16 = vadd.f32 %v2659_v36, %v2658_v61  ;;  %v4434_v19 = vld [vmem:[%s6024_s3 + $0x148] ss:$16 sps:$4 sm:$0xff]   ;;  %v4439_v34 = vld [vmem:[%s6024_s3 + $0x16c] ss:$16 sps:$4 sm:$0xff]   ;;  %v4453_v44 = vld [vmem:[%s6026_s5] sm:$0xff]  }
 0x209   : > { %v2664_v51 = vrot.slane %v2663_v3, 4  ;;  %v2654_v26 = vrot.slane %v2653_v6, 1  ;;  %v4437_v12 = vld [vmem:[%s6024_s3 + $0x168] ss:$16 sps:$4 sm:$0xff]   ;;  %v4442_v2 = vld [vmem:[%s6024_s3 + $0x18c] ss:$16 sps:$4 sm:$0xff]  }
 0x20a   : > { %v2661_v20 = vrot.slane %v2660_v16, 1  ;;  %v2671_v39 = vrot.slane %v2670_v9, 4  ;;  %v4440_v31 = vld [vmem:[%s6024_s3 + $0x188] ss:$16 sps:$4 sm:$0xff]   ;;  %v4445_v61 = vld [vmem:[%s6024_s3 + $0x1ac] ss:$16 sps:$4 sm:$0xff]  }
 0x20b   : > { %v2665_v7 = vadd.f32 %v2664_v51, %v2663_v3  ;;  %v2655_v47 = vadd.f32 %v2654_v26, %v2653_v6  ;;  %v4443_v45 = vld [vmem:[%s6024_s3 + $0x1a8] ss:$16 sps:$4 sm:$0xff]   ;;  %v4448_v24 = vld [vmem:[%s6024_s3 + $0x1cc] ss:$16 sps:$4 sm:$0xff]  }
 0x20c   : > { %v2662_v50 = vadd.f32 %v2661_v20, %v2660_v16  ;;  %v2672_v0 = vadd.f32 %v2671_v39, %v2670_v9  ;;  %v4451_v46 = vld [vmem:[%s6024_s3 + $0x1ec] ss:$16 sps:$4 sm:$0xff]   ;;  %v4449_v36 = vld [vmem:[%s6024_s3 + $0x1e8] ss:$16 sps:$4 sm:$0xff]   ;;  %v4456_v9 = vld [vmem:[%s6026_s5 + $0x50] sm:$0xff]  }
 0x20d   : > { %v2666_v43 = vrot.slane %v2665_v7, 2  ;;  %v2704_v55 = vsel %vm2703_vm2, %v2655_v47, %v2702_v1  ;;  %v4446_v1 = vld [vmem:[%s6024_s3 + $0x1c8] ss:$16 sps:$4 sm:$0xff]   ;;  %v4457_v16 = vld [vmem:[%s6026_s5 + $0x10] sm:$0xff]   ;;  %v4460_v20 = vld [vmem:[%s6026_s5 + $0x60] sm:$0xff]  }
 0x20e   : > { %v2673_v23 = vrot.slane %v2672_v0, 2  ;;  %v2712_v38 = vsel %vm2703_vm2, %v2662_v50, %v2711_v62  ;;  %v4452_v62 = vld [vmem:[%s6026_s5 + $0x40] sm:$0xff]   ;;  %v4454_v3 = vld [vmem:[%s6026_s5 + $0x48] sm:$0xff]   ;;  %v4458_v51 = vld [vmem:[%s6026_s5 + $0x58] sm:$0xff]  }
 0x20f   : > { %v2667_v54 = vadd.f32 %v2666_v43, %v2665_v7  ;;  %v4455_v6 = vld [vmem:[%s6026_s5 + $0x8] sm:$0xff]   ;;  %v4459_v26 = vld [vmem:[%s6026_s5 + $0x18] sm:$0xff]   ;;  %v4461_v39 = vld [vmem:[%s6026_s5 + $0x20] sm:$0xff]  }
 0x210   : > { %v2674_v15 = vadd.f32 %v2673_v23, %v2672_v0  ;;  %v4462_v7 = vld [vmem:[%s6026_s5 + $0x68] sm:$0xff]   ;;  %v4464_v50 = vld [vmem:[%s6026_s5 + $0x70] sm:$0xff]   ;;  %v4466_v43 = vld [vmem:[%s6026_s5 + $0x78] sm:$0xff]  }
 0x211   : > { %v2668_v27 = vrot.slane %v2667_v54, 1  ;;  %v4463_v47 = vld [vmem:[%s6026_s5 + $0x28] sm:$0xff]   ;;  %v4465_v0 = vld [vmem:[%s6026_s5 + $0x30] sm:$0xff]   ;;  %v4468_v23 = vld [vmem:[%s6026_s5 + $0xc0] sm:$0xff]  }
 0x212   : > { %v2675_v42 = vrot.slane %v2674_v15, 1 }
 0x213   : > { %v2669_v48 = vadd.f32 %v2668_v27, %v2667_v54 }
 0x214   : > { %v2676_v60 = vadd.f32 %v2675_v42, %v2674_v15 }
 0x215   : > { %v2706_v30 = vsel %vm2705_vm3, %v2669_v48, %v2704_v55  ;;  %v4467_v55 = vld [vmem:[%s6026_s5 + $0x38] sm:$0xff]  }
 0x216   : > { %v2713_v56 = vsel %vm2705_vm3, %v2676_v60, %v2712_v38  ;;  %v2722_v40 = vmul.f32 0.0625, %v2706_v30  ;;  %v2790_v38 = vld [vmem:[%s6025_s4] sm:$0xf] }
 0x217   : > { %v2723_v22 = vmul.f32 0.0625, %v2713_v56  ;;  %v2795_v54 = vrot.slane %v2790_v38, %v2491_v53  ;;  %v2799_v15 = vrot.slane %v2790_v38, %v2495_v35  ;;  %v4470_v53 = vld [vmem:[%s6026_s5 + $0xc8] sm:$0xff]  }
 0x218   : > { %v5811_v58 = vpack.c.bf16 %v2722_v40, %v2722_v40  ;;  %v4471_v35 = vld [vmem:[%s6026_s5 + $0x88] sm:$0xff]  }
 0x219   : > { %v2725_v17 = vpack.c.bf16 %v2723_v22, %v2723_v22 }
 0x21b   : > { %3164 = vmatprep.mubr.bf16.mxu1 %v2725_v17 }
 0x21c   : > { %3165 = vmatmul.mubr.bf16.vlgmr.msra.gmra.mrb[32].mxu1 %v5811_v58 }
 0x21d   : > { %3174 = vmatpush1.bf16.msra.mxu1 %v4404_v33  ;;  %3205 = vmatprep.mubr.bf16.mxu1 %v2725_v17  ;;  %v4469_v33 = vld [vmem:[%s6026_s5 + $0x80] sm:$0xff]  }
 0x21e   : > { %3175 = vmatprep.subr.bf16.mxu1 %v4409_v37  ;;  %v4472_v37 = vld [vmem:[%s6026_s5 + $0xd0] sm:$0xff]  }
 0x221   : > { %3176 = vmatpush1.bf16.msra.mxu1 %v4407_v11  ;;  %v4473_v11 = vld [vmem:[%s6026_s5 + $0x90] sm:$0xff]  }
 0x222   : > { %3177 = vmatprep.subr.bf16.mxu1 %v4412_v18  ;;  %v4474_v18 = vld [vmem:[%s6026_s5 + $0xd8] sm:$0xff]  }
 0x225   : > { %3178 = vmatpush1.bf16.msra.mxu1 %v4410_v8  ;;  %v4475_v8 = vld [vmem:[%s6026_s5 + $0x98] sm:$0xff]  }
 0x226   : > { %3179 = vmatprep.subr.bf16.mxu1 %v4415_v41  ;;  %v4476_v41 = vld [vmem:[%s6026_s5 + $0xe0] sm:$0xff]  }
 0x229   : > { %3180 = vmatpush1.bf16.msra.mxu1 %v4413_v28  ;;  %v4477_v28 = vld [vmem:[%s6026_s5 + $0xa0] sm:$0xff]  }
 0x22a   : > { %3181 = vmatprep.subr.bf16.mxu1 %v4418_v21  ;;  %v4478_v21 = vld [vmem:[%s6026_s5 + $0xe8] sm:$0xff]  }
 0x22d   : > { %3182 = vmatpush1.bf16.msra.mxu1 %v4416_v25  ;;  %v4479_v25 = vld [vmem:[%s6026_s5 + $0xa8] sm:$0xff]  }
 0x22e   : > { %3183 = vmatprep.subr.bf16.mxu1 %v4421_v10  ;;  %v4480_v10 = vld [vmem:[%s6026_s5 + $0xf0] sm:$0xff]  }
 0x231   : > { %3184 = vmatpush1.bf16.msra.mxu1 %v4419_v49  ;;  %v4481_v49 = vld [vmem:[%s6026_s5 + $0xb0] sm:$0xff]  }
 0x232   : > { %3185 = vmatprep.subr.bf16.mxu1 %v4424_v59  ;;  %v4482_v59 = vld [vmem:[%s6026_s5 + $0xf8] sm:$0xff]  }
 0x235   : > { %3186 = vmatpush1.bf16.msra.mxu1 %v4422_v13  ;;  %v4483_v13 = vld [vmem:[%s6026_s5 + $0xb8] sm:$0xff]  }
 0x236   : > { %3187 = vmatprep.subr.bf16.mxu1 %v4427_v4  ;;  %v2802_v4 = vsub.s32 2, %v5721_v29 }
 0x239   : > { %3188 = vmatpush1.bf16.msra.mxu1 %v4425_v14  ;;  %v2806_v14 = vsub.s32 3, %v5721_v29 }
 0x23a   : > { %3189 = vmatprep.subr.bf16.mxu1 %v4430_v57  ;;  %v2803_v57 = vrot.slane %v2790_v38, %v2802_v4 }
 0x23d   : > { %3190 = vmatpush1.bf16.msra.mxu1 %v4428_v5  ;;  %v2807_v5 = vrot.slane %v2790_v38, %v2806_v14 }
 0x23e   : > { %3191 = vmatprep.subr.bf16.mxu1 %v4433_v32 }
 0x241   : > { %3192 = vmatpush1.bf16.msra.mxu1 %v4431_v52 }
 0x242   : > { %3193 = vmatprep.subr.bf16.mxu1 %v4436_v63 }
 0x245   : > { %3194 = vmatpush1.bf16.msra.mxu1 %v4434_v19 }
 0x246   : > { %3195 = vmatprep.subr.bf16.mxu1 %v4439_v34 }
 0x249   : > { %3196 = vmatpush1.bf16.msra.mxu1 %v4437_v12 }
 0x24a   : > { %3197 = vmatprep.subr.bf16.mxu1 %v4442_v2 }
 0x24d   : > { %3198 = vmatpush1.bf16.msra.mxu1 %v4440_v31 }
 0x24e   : > { %3199 = vmatprep.subr.bf16.mxu1 %v4445_v61 }
 0x251   : > { %3200 = vmatpush1.bf16.msra.mxu1 %v4443_v45 }
 0x252   : > { %3201 = vmatprep.subr.bf16.mxu1 %v4448_v24 }
 0x255   : > { %3202 = vmatpush1.bf16.msra.mxu1 %v4446_v1 }
 0x256   : > { %3203 = vmatprep.subr.bf16.mxu1 %v4451_v46 }
 0x259   : > { %3204 = vmatpush1.bf16.msra.mxu1 %v4449_v36 }
 0x25a   : > { %4024 = vmatprep.subr.bf16.mxu1 %v4452_v62  ;;  %v3989_v62 = vld [vmem:[%s6027_s6] ss:$0 sm:$0xff] }
 0x25c   : > { %3206 = vmatmul.mubr.bf16.vlgmr.msra.gmra.mrb[36].mxu1 %v5811_v58 }
 0x25d   : > { %4025 = vmatpush3.bf16.msra.mxu1 %v4453_v44 }
 0x25e   : > { %4026 = vmatprep.subr.bf16.mxu1 %v4454_v3 }
 0x261   : > { %4027 = vmatpush3.bf16.msra.mxu1 %v4455_v6 }
 0x262   : > { %4028 = vmatprep.subr.bf16.mxu1 %v4456_v9 }
 0x265   : > { %4029 = vmatpush3.bf16.msra.mxu1 %v4457_v16 }
 0x266   : > { %4030 = vmatprep.subr.bf16.mxu1 %v4458_v51 }
 0x269   : > { %4031 = vmatpush3.bf16.msra.mxu1 %v4459_v26 }
 0x26a   : > { %4032 = vmatprep.subr.bf16.mxu1 %v4460_v20 }
 0x26d   : > { %4033 = vmatpush3.bf16.msra.mxu1 %v4461_v39 }
 0x26e   : > { %4034 = vmatprep.subr.bf16.mxu1 %v4462_v7 }
 0x271   : > { %4035 = vmatpush3.bf16.msra.mxu1 %v4463_v47 }
 0x272   : > { %4036 = vmatprep.subr.bf16.mxu1 %v4464_v50 }
 0x275   : > { %4037 = vmatpush3.bf16.msra.mxu1 %v4465_v0 }
 0x276   : > { %4038 = vmatprep.subr.bf16.mxu1 %v4466_v43 }
 0x279   : > { %4039 = vmatpush3.bf16.msra.mxu1 %v4467_v55 }
 0x27a   : > { %4046 = vmatprep.subr.bf16.mxu1 %v4468_v23 }
 0x2ef   : > { %v3166_v27 = vpop.f32.mrb[32].mxu1 }
 0x2f0   : > { %v3167_v42 = vadd.f32 %v3166_v27, %v2795_v54  ;;  %v3168_v48 = vpop.f32.mrb[33].mxu1 }
 0x2f1   : > { %v3169_v60 = vadd.f32 %v3168_v48, %v2799_v15  ;;  %v3170_v30 = vpop.f32.mrb[34].mxu1 }
 0x2f2   : > { %v3214_v56 = vmax.f32 %v3167_v42, 0.0  ;;  %v3171_v40 = vpop.f32.mrb[35].mxu1 }
 0x2f3   : > { %v3215_v22 = vmax.f32 %v3169_v60, 0.0 }
 0x2f4   : > { %v3218_v58 = vpack.c.bf16 %v3214_v56, %v3214_v56 }
 0x2f5   : > { %v3219_v17 = vpack.c.bf16 %v3215_v22, %v3215_v22 }
 0x2f7   : > { %3517 = vmatprep.mubr.bf16.mxu1 %v3219_v17 }
 0x2f8   : > { %3518 = vmatmul.mubr.bf16.vlgmr.msra.gmra.mrb[40].mxu1 %v3218_v58 }
 0x2f9   : > { %4047 = vmatpush3.bf16.msra.mxu1 %v4469_v33 }
 0x2fa   : > { %4048 = vmatprep.subr.bf16.mxu1 %v4470_v53 }
 0x2fd   : > { %4049 = vmatpush3.bf16.msra.mxu1 %v4471_v35 }
 0x2fe   : > { %4050 = vmatprep.subr.bf16.mxu1 %v4472_v37 }
 0x301   : > { %4051 = vmatpush3.bf16.msra.mxu1 %v4473_v11 }
 0x302   : > { %4052 = vmatprep.subr.bf16.mxu1 %v4474_v18 }
 0x305   : > { %4053 = vmatpush3.bf16.msra.mxu1 %v4475_v8 }
 0x306   : > { %4054 = vmatprep.subr.bf16.mxu1 %v4476_v41 }
 0x309   : > { %4055 = vmatpush3.bf16.msra.mxu1 %v4477_v28 }
 0x30a   : > { %4056 = vmatprep.subr.bf16.mxu1 %v4478_v21 }
 0x30d   : > { %4057 = vmatpush3.bf16.msra.mxu1 %v4479_v25 }
 0x30e   : > { %4058 = vmatprep.subr.bf16.mxu1 %v4480_v10 }
 0x311   : > { %4059 = vmatpush3.bf16.msra.mxu1 %v4481_v49 }
 0x312   : > { %4060 = vmatprep.subr.bf16.mxu1 %v4482_v59 }
 0x315   : > { %4061 = vmatpush3.bf16.msra.mxu1 %v4483_v13 }
 0x32f   : > { %v3207_v32 = vpop.f32.mrb[36].mxu1 }
 0x330   : > { %v3208_v52 = vadd.f32 %v3207_v32, %v2803_v57  ;;  %v3209_v63 = vpop.f32.mrb[37].mxu1 }
 0x331   : > { %v3210_v19 = vadd.f32 %v3209_v63, %v2807_v5  ;;  %v3211_v34 = vpop.f32.mrb[38].mxu1 }
 0x332   : > { %v3216_v12 = vmax.f32 %v3208_v52, 0.0  ;;  %v3212_v2 = vpop.f32.mrb[39].mxu1 }
 0x333   : > { %v3217_v31 = vmax.f32 %v3210_v19, 0.0 }
 0x334   : > { %v3220_v45 = vpack.c.bf16 %v3216_v12, %v3216_v12 }
 0x335   : > { %v3221_v61 = vpack.c.bf16 %v3217_v31, %v3217_v31 }
 0x337   : > { %3557 = vmatprep.mubr.bf16.mxu1 %v3221_v61 }
 0x338   : > { %3558 = vmatmul.mubr.bf16.vlgmr.msra.gmra.mrb[44].mxu1 %v3220_v45 }
 0x3cb   : > { %v4040_v24 = vpop.f32.mrb[40].mxu1 }
 0x3cc   : > { %v4041_v1 = vpop.f32.mrb[41].mxu1 }
 0x3cd   : > { %v4042_v46 = vadd.f32 %v4041_v1, %v4040_v24  ;;  %v4043_v29 = vpop.f32.mrb[42].mxu1 }
 0x3ce   : > { %v4044_v36 = vpop.f32.mrb[43].mxu1 }
 0x3cf   : > { %v3520_v6 = vadd.f32 %v4042_v46, %v3989_v62 }
 0x40b   : > { %v4062_v44 = vpop.f32.mrb[44].mxu1 }
 0x40c   : > { %v4063_v3 = vpop.f32.mrb[45].mxu1 }
 0x40d   : > { %v4064_v9 = vadd.f32 %v4063_v3, %v4062_v44  ;;  %v4065_v16 = vpop.f32.mrb[46].mxu1 }
 0x40e   : > { %v4066_v51 = vpop.f32.mrb[47].mxu1 }
 0x40f   : > { %v3560_v26 = vadd.f32 %v4064_v9, %v3520_v6 }
 0x411   : > { %3565 = vst [vmem:[%s281_s18] sm:$0xff] %v3560_v26 }
 0x412 PF: > { %s17_s24 = sadd.s32 1, %s4562_s24  }
 0x413   : > { %p14_p5 = scmp.ge.s32.totalorder %s17_s24, 4  }
 0x415   :  { %16 = sbr.rel (!%p14_p5) target bundleno = 1 (0x1), region = 82 }

</bundles_post_ra>
